<compile_context>
chip_gen: v7x
topology: tpu7x:2x2x1
jax: 0.10.0
libtpu: 0.0.40
codegen_flags: <defaults>
</compile_context>

<pallas_src>
import jax
import jax.numpy as jnp
from jax.experimental import pallas as pl
from jax.experimental.pallas import tpu as pltpu


# Row tiles are multiples of 16 (bf16 sublane packing).  1024 rows keeps the
# per-stage working set (double-buffered patch tiles + output + resident
# weights) to a few MiB while amortizing the ~0.35 us per-grid-step overhead.
_CONV_ROW_TILE = 1024
_FC_ROW_TILE = 512
_VMEM_LIMIT_BYTES = 32 * 1024 * 1024


# ---------------- Pallas kernels (hot path) ----------------

def conv_pool_relu_kernel(p_ref, w_ref, b_ref, o_ref):
    """Fused conv-as-matmul + 2x2 max-pool + bias + ReLU.

    p_ref: (4, rows_tile, K*K*Cin) bf16 -- the 4 pool-shift im2col patch
           matrices stacked on the leading axis (feature order kh, kw, cin).
    w_ref: (K*K*Cin, Cout) bf16      b_ref: (1, Cout) f32
    o_ref: (rows_tile, Cout)
    """
    nshift, tr, feat = p_ref.shape
    cout = w_ref.shape[1]
    # One MXU matmul covering all 4 shifts (collapsing the leading dims is a
    # free relayout: tr is a multiple of the sublane tile).
    p = p_ref[...].reshape(nshift * tr, feat)
    y = jnp.dot(p, w_ref[...], preferred_element_type=jnp.float32)
    # 2x2 max-pool == max over the 4 shifts; pure VPU, hides under the MXU.
    y = jnp.max(y.reshape(nshift, tr, cout), axis=0)
    # Bias + ReLU in f32 (per-channel bias commutes with the pool max).
    y = jnp.maximum(y + b_ref[...], 0.0)
    o_ref[...] = y.astype(o_ref.dtype)


def fc_head_kernel(x_ref, w1_ref, b1_ref, w2_ref, b2_ref, o_ref):
    """fc1 + ReLU + (dropout=identity in eval) + fc2 + log_softmax(dim=1)."""
    h = jnp.dot(x_ref[...], w1_ref[...], preferred_element_type=jnp.float32)
    h = jnp.maximum(h + b1_ref[...], 0.0)
    # TODO(synk): F.dropout / Dropout2d in training mode (stochastic masking)
    # not implemented -- this kernel implements inference-mode (identity).
    logits = jnp.dot(h.astype(w2_ref.dtype), w2_ref[...],
                     preferred_element_type=jnp.float32)
    logits = logits + b2_ref[...]
    m = jnp.max(logits, axis=-1, keepdims=True)
    s = logits - m
    lse = jnp.log(jnp.sum(jnp.exp(s), axis=-1, keepdims=True))
    o_ref[...] = s - lse


# ---------------- pallas_call wrappers ----------------

def conv_pool_relu(patches, w, b, *, out_dtype, row_tile=_CONV_ROW_TILE):
    nshift, rows, feat = patches.shape
    cout = w.shape[1]
    tr = rows if rows <= row_tile else row_tile   # rows is a multiple of 16
    grid = (pl.cdiv(rows, tr),)
    return pl.pallas_call(
        conv_pool_relu_kernel,
        out_shape=jax.ShapeDtypeStruct((rows, cout), out_dtype),
        grid=grid,
        in_specs=[
            pl.BlockSpec((nshift, tr, feat), lambda i: (0, i, 0)),
            pl.BlockSpec((feat, cout), lambda i: (0, 0)),   # weights resident
            pl.BlockSpec((1, cout), lambda i: (0, 0)),
        ],
        out_specs=pl.BlockSpec((tr, cout), lambda i: (i, 0)),
        compiler_params=pltpu.CompilerParams(
            dimension_semantics=("parallel",),
            vmem_limit_bytes=_VMEM_LIMIT_BYTES,
        ),
    )(patches, w, b)


def fc_head(x, w1, b1, w2, b2, *, row_tile=_FC_ROW_TILE):
    rows, feat = x.shape
    hidden = w1.shape[1]
    nout = w2.shape[1]
    tr = rows if rows <= row_tile else row_tile
    grid = (pl.cdiv(rows, tr),)
    return pl.pallas_call(
        fc_head_kernel,
        out_shape=jax.ShapeDtypeStruct((rows, nout), jnp.float32),
        grid=grid,
        in_specs=[
            pl.BlockSpec((tr, feat), lambda i: (i, 0)),
            pl.BlockSpec((feat, hidden), lambda i: (0, 0)),
            pl.BlockSpec((1, hidden), lambda i: (0, 0)),
            pl.BlockSpec((hidden, nout), lambda i: (0, 0)),
            pl.BlockSpec((1, nout), lambda i: (0, 0)),
        ],
        out_specs=pl.BlockSpec((tr, nout), lambda i: (i, 0)),
        compiler_params=pltpu.CompilerParams(
            dimension_semantics=("parallel",),
            vmem_limit_bytes=_VMEM_LIMIT_BYTES,
        ),
    )(x, w1, b1, w2, b2)


# ---------------- JAX glue (patch extraction, params) ----------------

def im2col_pooled_nhwc(x_nhwc, K, pooled_hw):
    """Stacked im2col for a KxK valid conv followed by a 2x2/stride-2 max-pool.

    x_nhwc: (B, H, W, C).  Returns (4, B*PH*PW, K*K*C): axis 0 indexes the
    2x2 pool-window shift (di, dj); row r = (b, i, j) pooled position; the
    feature index is (kh*K + kw)*C + c (channels-last, matching the
    (kh, kw, cin, cout) weight layout).
    """
    B, H, W, C = x_nhwc.shape
    PH, PW = pooled_hw
    shifts = []
    for di in range(2):
        for dj in range(2):
            cols = []
            for kh in range(K):
                for kw in range(K):
                    sl = x_nhwc[:,
                                di + kh: di + kh + 2 * PH: 2,
                                dj + kw: dj + kw + 2 * PW: 2, :]   # (B,PH,PW,C)
                    cols.append(sl)
            p = jnp.stack(cols, axis=3)                 # (B, PH, PW, K*K, C)
            shifts.append(p.reshape(B * PH * PW, K * K * C))
    return jnp.stack(shifts, axis=0)


def init_params(key):
    ks = jax.random.split(key, 8)

    def u(k, shape, fan_in):
        bound = 1.0 / (fan_in ** 0.5)
        return jax.random.uniform(k, shape, jnp.float32, -bound, bound)

    return {
        "conv1_w": u(ks[0], (10, 1, 5, 5), 1 * 25),
        "conv1_b": u(ks[1], (10,), 1 * 25),
        "conv2_w": u(ks[2], (20, 10, 5, 5), 10 * 25),
        "conv2_b": u(ks[3], (20,), 10 * 25),
        "fc1_w":   u(ks[4], (50, 320), 320),
        "fc1_b":   u(ks[5], (50,), 320),
        "fc2_w":   u(ks[6], (10, 50), 50),
        "fc2_b":   u(ks[7], (10,), 50),
    }


def prepare_params(params, compute_dtype):
    """One-time layout/dtype prep: PyTorch layouts -> kernel layouts."""
    # conv weights: (cout, cin, kh, kw) -> rows indexed by (kh*K + kw)*cin + cin
    w1m = jnp.transpose(params["conv1_w"], (2, 3, 1, 0)).reshape(25, 10)
    w2m = jnp.transpose(params["conv2_w"], (2, 3, 1, 0)).reshape(250, 20)
    # fc1: PyTorch flattens activations as (c, h, w); ours are flattened
    # (h, w, c) -> permute fc1's input columns once instead of transposing
    # the activations between pallas_calls.
    fc1 = params["fc1_w"].reshape(50, 20, 4, 4).transpose(0, 2, 3, 1)
    fc1 = fc1.reshape(50, 320)
    return {
        "w1m": w1m.astype(compute_dtype),
        "b1": params["conv1_b"].reshape(1, 10).astype(jnp.float32),
        "w2m": w2m.astype(compute_dtype),
        "b2": params["conv2_b"].reshape(1, 20).astype(jnp.float32),
        "fc1_w": fc1.T.astype(compute_dtype),               # (320, 50)
        "fc1_b": params["fc1_b"].reshape(1, 50).astype(jnp.float32),
        "fc2_w": params["fc2_w"].T.astype(compute_dtype),   # (50, 10)
        "fc2_b": params["fc2_b"].reshape(1, 10).astype(jnp.float32),
    }


def cnn_mnist_forward(params, x, compute_dtype=jnp.bfloat16):
    B = x.shape[0]
    p = prepare_params(params, compute_dtype)

    # NCHW -> NHWC (channels stay on the lane axis between stages).
    x_nhwc = jnp.transpose(x, (0, 2, 3, 1)).astype(compute_dtype)  # (B,28,28,1)

    # Stage 1: relu(max_pool2(conv1(x)))            conv1: 1->10, k=5
    p1 = im2col_pooled_nhwc(x_nhwc, 5, (12, 12))            # (4, B*144, 25)
    y1 = conv_pool_relu(p1, p["w1m"], p["b1"], out_dtype=compute_dtype)
    y1 = y1.reshape(B, 12, 12, 10)                          # NHWC, no transpose

    # Stage 2: relu(max_pool2(dropout2d(conv2(y1))))  conv2: 10->20, k=5
    # (dropout2d is identity in inference mode)
    p2 = im2col_pooled_nhwc(y1, 5, (4, 4))                  # (4, B*16, 250)
    y2 = conv_pool_relu(p2, p["w2m"], p["b2"], out_dtype=compute_dtype)
    y2 = y2.reshape(B, 320)                                 # (h, w, c) flatten

    # Stage 3: fc1 + relu + dropout(id) + fc2 + log_softmax
    return fc_head(y2, p["fc1_w"], p["fc1_b"], p["fc2_w"], p["fc2_b"])


if __name__ == "__main__":
    key = jax.random.PRNGKey(0)
    pkey, xkey = jax.random.split(key)
    params = init_params(pkey)
    # MNIST-shaped input is required by the module (Linear(320, 50) implies 28x28).
    x = jax.random.normal(xkey, (2, 1, 28, 28), dtype=jnp.float32)

    out = jax.jit(cnn_mnist_forward)(params, x)
    out = jax.block_until_ready(out)
    assert out.shape == (2, 10)
    assert bool(jnp.all(jnp.isfinite(out)))
    # log_softmax rows must (approximately) sum to 1 in probability space.
    assert bool(jnp.allclose(jnp.sum(jnp.exp(out), axis=-1), 1.0, atol=1e-3))
    print("KERNEL_OK")
</pallas_src>

<mosaic_0001>
module attributes {stable_mosaic.version = 11 : i64} {
  func.func @conv_pool_relu_kernel(%arg0: i32, %arg1: memref<4x288x25xbf16, #tpu.memory_space<vmem>>, %arg2: memref<25x10xbf16, #tpu.memory_space<vmem>>, %arg3: memref<1x10xf32, #tpu.memory_space<vmem>>, %arg4: memref<288x10xbf16, #tpu.memory_space<vmem>>) attributes {dimension_semantics = [#tpu.dimension_semantics<parallel>], iteration_bounds = array<i64: 1>, scalar_prefetch = 0 : i64, scratch_operands = 0 : i64, tpu.core_type = #tpu.core_type<tc>, window_params = [{transform_indices = @transform_0, window_bounds = array<i64: 4, 288, 25>}, {pipeline_mode = #tpu.pipeline_mode<synchronous>, transform_indices = @transform_1, window_bounds = array<i64: 25, 10>}, {pipeline_mode = #tpu.pipeline_mode<synchronous>, transform_indices = @transform_2, window_bounds = array<i64: 1, 10>}, {transform_indices = @transform_3, window_bounds = array<i64: 288, 10>}]} {
    %c0 = arith.constant 0 : index
    %c0_0 = arith.constant 0 : index
    %c0_1 = arith.constant 0 : index
    %0 = vector.load %arg1[%c0, %c0_0, %c0_1] : memref<4x288x25xbf16, #tpu.memory_space<vmem>>, vector<4x288x25xbf16>
    %1 = vector.shape_cast %0 : vector<4x288x25xbf16> to vector<1152x25xbf16>
    %c0_2 = arith.constant 0 : index
    %c0_3 = arith.constant 0 : index
    %2 = vector.load %arg2[%c0_2, %c0_3] : memref<25x10xbf16, #tpu.memory_space<vmem>>, vector<25x10xbf16>
    %cst = arith.constant dense<0.000000e+00> : vector<1152x10xf32>
    %3 = tpu.matmul %1, %2, %cst {dimension_numbers = #tpu.dot_dimension_numbers<[1], [0], [0], [1], [0, 0, 1, 1], [], []>} : vector<1152x25xbf16>, vector<25x10xbf16>, vector<1152x10xf32> -> vector<1152x10xf32>
    %4 = vector.shape_cast %3 : vector<1152x10xf32> to vector<4x288x10xf32>
    %cst_4 = arith.constant dense<0xFF800000> : vector<288x10xf32>
    %5 = vector.multi_reduction <maximumf>, %4, %cst_4 [0] : vector<4x288x10xf32> to vector<288x10xf32>
    %c0_5 = arith.constant 0 : index
    %c0_6 = arith.constant 0 : index
    %6 = vector.load %arg3[%c0_5, %c0_6] : memref<1x10xf32, #tpu.memory_space<vmem>>, vector<1x10xf32>
    %7 = vector.broadcast %6 : vector<1x10xf32> to vector<288x10xf32>
    %8 = arith.addf %5, %7 : vector<288x10xf32>
    %cst_7 = arith.constant 0.000000e+00 : f32
    %9 = vector.broadcast %cst_7 : f32 to vector<288x10xf32>
    %10 = arith.maximumf %8, %9 : vector<288x10xf32>
    %11 = arith.truncf %10 : vector<288x10xf32> to vector<288x10xbf16>
    %c0_8 = arith.constant 0 : index
    %c0_9 = arith.constant 0 : index
    %12 = vector.load %arg4[%c0_8, %c0_9] : memref<288x10xbf16, #tpu.memory_space<vmem>>, vector<288x10xbf16>
    tpu.vector_store %arg4[%c0_8, %c0_9], %11 {strides = array<i32>} : memref<288x10xbf16, #tpu.memory_space<vmem>>, vector<288x10xbf16>,
    return
  }
  func.func @transform_0(%arg0: i32) -> (i32, i32, i32) {
    %c0_i32 = arith.constant 0 : i32
    %c0_i32_0 = arith.constant 0 : i32
    %c0_i32_1 = arith.constant 0 : i32
    return %c0_i32, %arg0, %c0_i32_0 : i32, i32, i32
  }
  func.func @transform_1(%arg0: i32) -> (i32, i32) {
    %c0_i32 = arith.constant 0 : i32
    %c0_i32_0 = arith.constant 0 : i32
    %c0_i32_1 = arith.constant 0 : i32
    return %c0_i32, %c0_i32_0 : i32, i32
  }
  func.func @transform_2(%arg0: i32) -> (i32, i32) {
    %c0_i32 = arith.constant 0 : i32
    %c0_i32_0 = arith.constant 0 : i32
    %c0_i32_1 = arith.constant 0 : i32
    return %c0_i32, %c0_i32_0 : i32, i32
  }
  func.func @transform_3(%arg0: i32) -> (i32, i32) {
    %c0_i32 = arith.constant 0 : i32
    %c0_i32_0 = arith.constant 0 : i32
    return %arg0, %c0_i32 : i32, i32
  }
}

module attributes {stable_mosaic.version = 11 : i64} {
  func.func @conv_pool_relu_kernel(%arg0: i32, %arg1: memref<4x32x250xbf16, #tpu.memory_space<vmem>>, %arg2: memref<250x20xbf16, #tpu.memory_space<vmem>>, %arg3: memref<1x20xf32, #tpu.memory_space<vmem>>, %arg4: memref<32x20xbf16, #tpu.memory_space<vmem>>) attributes {dimension_semantics = [#tpu.dimension_semantics<parallel>], iteration_bounds = array<i64: 1>, scalar_prefetch = 0 : i64, scratch_operands = 0 : i64, tpu.core_type = #tpu.core_type<tc>, window_params = [{transform_indices = @transform_0, window_bounds = array<i64: 4, 32, 250>}, {pipeline_mode = #tpu.pipeline_mode<synchronous>, transform_indices = @transform_1, window_bounds = array<i64: 250, 20>}, {pipeline_mode = #tpu.pipeline_mode<synchronous>, transform_indices = @transform_2, window_bounds = array<i64: 1, 20>}, {transform_indices = @transform_3, window_bounds = array<i64: 32, 20>}]} {
    %c0 = arith.constant 0 : index
    %c0_0 = arith.constant 0 : index
    %c0_1 = arith.constant 0 : index
    %0 = vector.load %arg1[%c0, %c0_0, %c0_1] : memref<4x32x250xbf16, #tpu.memory_space<vmem>>, vector<4x32x250xbf16>
    %1 = vector.shape_cast %0 : vector<4x32x250xbf16> to vector<128x250xbf16>
    %c0_2 = arith.constant 0 : index
    %c0_3 = arith.constant 0 : index
    %2 = vector.load %arg2[%c0_2, %c0_3] : memref<250x20xbf16, #tpu.memory_space<vmem>>, vector<250x20xbf16>
    %cst = arith.constant dense<0.000000e+00> : vector<128x20xf32>
    %3 = tpu.matmul %1, %2, %cst {dimension_numbers = #tpu.dot_dimension_numbers<[1], [0], [0], [1], [0, 0, 1, 1], [], []>} : vector<128x250xbf16>, vector<250x20xbf16>, vector<128x20xf32> -> vector<128x20xf32>
    %4 = vector.shape_cast %3 : vector<128x20xf32> to vector<4x32x20xf32>
    %cst_4 = arith.constant dense<0xFF800000> : vector<32x20xf32>
    %5 = vector.multi_reduction <maximumf>, %4, %cst_4 [0] : vector<4x32x20xf32> to vector<32x20xf32>
    %c0_5 = arith.constant 0 : index
    %c0_6 = arith.constant 0 : index
    %6 = vector.load %arg3[%c0_5, %c0_6] : memref<1x20xf32, #tpu.memory_space<vmem>>, vector<1x20xf32>
    %7 = vector.broadcast %6 : vector<1x20xf32> to vector<32x20xf32>
    %8 = arith.addf %5, %7 : vector<32x20xf32>
    %cst_7 = arith.constant 0.000000e+00 : f32
    %9 = vector.broadcast %cst_7 : f32 to vector<32x20xf32>
    %10 = arith.maximumf %8, %9 : vector<32x20xf32>
    %11 = arith.truncf %10 : vector<32x20xf32> to vector<32x20xbf16>
    %c0_8 = arith.constant 0 : index
    %c0_9 = arith.constant 0 : index
    %12 = vector.load %arg4[%c0_8, %c0_9] : memref<32x20xbf16, #tpu.memory_space<vmem>>, vector<32x20xbf16>
    tpu.vector_store %arg4[%c0_8, %c0_9], %11 {strides = array<i32>} : memref<32x20xbf16, #tpu.memory_space<vmem>>, vector<32x20xbf16>,
    return
  }
  func.func @transform_0(%arg0: i32) -> (i32, i32, i32) {
    %c0_i32 = arith.constant 0 : i32
    %c0_i32_0 = arith.constant 0 : i32
    %c0_i32_1 = arith.constant 0 : i32
    return %c0_i32, %arg0, %c0_i32_0 : i32, i32, i32
  }
  func.func @transform_1(%arg0: i32) -> (i32, i32) {
    %c0_i32 = arith.constant 0 : i32
    %c0_i32_0 = arith.constant 0 : i32
    %c0_i32_1 = arith.constant 0 : i32
    return %c0_i32, %c0_i32_0 : i32, i32
  }
  func.func @transform_2(%arg0: i32) -> (i32, i32) {
    %c0_i32 = arith.constant 0 : i32
    %c0_i32_0 = arith.constant 0 : i32
    %c0_i32_1 = arith.constant 0 : i32
    return %c0_i32, %c0_i32_0 : i32, i32
  }
  func.func @transform_3(%arg0: i32) -> (i32, i32) {
    %c0_i32 = arith.constant 0 : i32
    %c0_i32_0 = arith.constant 0 : i32
    return %arg0, %c0_i32 : i32, i32
  }
}

module attributes {stable_mosaic.version = 11 : i64} {
  func.func @fc_head_kernel(%arg0: i32, %arg1: memref<2x320xbf16, #tpu.memory_space<vmem>>, %arg2: memref<320x50xbf16, #tpu.memory_space<vmem>>, %arg3: memref<1x50xf32, #tpu.memory_space<vmem>>, %arg4: memref<50x10xbf16, #tpu.memory_space<vmem>>, %arg5: memref<1x10xf32, #tpu.memory_space<vmem>>, %arg6: memref<2x10xf32, #tpu.memory_space<vmem>>) attributes {dimension_semantics = [#tpu.dimension_semantics<parallel>], iteration_bounds = array<i64: 1>, scalar_prefetch = 0 : i64, scratch_operands = 0 : i64, tpu.core_type = #tpu.core_type<tc>, window_params = [{transform_indices = @transform_0, window_bounds = array<i64: 2, 320>}, {pipeline_mode = #tpu.pipeline_mode<synchronous>, transform_indices = @transform_1, window_bounds = array<i64: 320, 50>}, {pipeline_mode = #tpu.pipeline_mode<synchronous>, transform_indices = @transform_2, window_bounds = array<i64: 1, 50>}, {pipeline_mode = #tpu.pipeline_mode<synchronous>, transform_indices = @transform_3, window_bounds = array<i64: 50, 10>}, {pipeline_mode = #tpu.pipeline_mode<synchronous>, transform_indices = @transform_4, window_bounds = array<i64: 1, 10>}, {transform_indices = @transform_5, window_bounds = array<i64: 2, 10>}]} {
    %c0 = arith.constant 0 : index
    %c0_0 = arith.constant 0 : index
    %0 = vector.load %arg1[%c0, %c0_0] : memref<2x320xbf16, #tpu.memory_space<vmem>>, vector<2x320xbf16>
    %c0_1 = arith.constant 0 : index
    %c0_2 = arith.constant 0 : index
    %1 = vector.load %arg2[%c0_1, %c0_2] : memref<320x50xbf16, #tpu.memory_space<vmem>>, vector<320x50xbf16>
    %cst = arith.constant dense<0.000000e+00> : vector<2x50xf32>
    %2 = tpu.matmul %0, %1, %cst {dimension_numbers = #tpu.dot_dimension_numbers<[1], [0], [0], [1], [0, 0, 1, 1], [], []>} : vector<2x320xbf16>, vector<320x50xbf16>, vector<2x50xf32> -> vector<2x50xf32>
    %c0_3 = arith.constant 0 : index
    %c0_4 = arith.constant 0 : index
    %3 = vector.load %arg3[%c0_3, %c0_4] : memref<1x50xf32, #tpu.memory_space<vmem>>, vector<1x50xf32>
    %4 = vector.broadcast %3 : vector<1x50xf32> to vector<2x50xf32>
    %5 = arith.addf %2, %4 : vector<2x50xf32>
    %cst_5 = arith.constant 0.000000e+00 : f32
    %6 = vector.broadcast %cst_5 : f32 to vector<2x50xf32>
    %7 = arith.maximumf %5, %6 : vector<2x50xf32>
    %8 = arith.truncf %7 : vector<2x50xf32> to vector<2x50xbf16>
    %c0_6 = arith.constant 0 : index
    %c0_7 = arith.constant 0 : index
    %9 = vector.load %arg4[%c0_6, %c0_7] : memref<50x10xbf16, #tpu.memory_space<vmem>>, vector<50x10xbf16>
    %cst_8 = arith.constant dense<0.000000e+00> : vector<2x10xf32>
    %10 = tpu.matmul %8, %9, %cst_8 {dimension_numbers = #tpu.dot_dimension_numbers<[1], [0], [0], [1], [0, 0, 1, 1], [], []>} : vector<2x50xbf16>, vector<50x10xbf16>, vector<2x10xf32> -> vector<2x10xf32>
    %c0_9 = arith.constant 0 : index
    %c0_10 = arith.constant 0 : index
    %11 = vector.load %arg5[%c0_9, %c0_10] : memref<1x10xf32, #tpu.memory_space<vmem>>, vector<1x10xf32>
    %12 = vector.broadcast %11 : vector<1x10xf32> to vector<2x10xf32>
    %13 = arith.addf %10, %12 : vector<2x10xf32>
    %cst_11 = arith.constant dense<0xFF800000> : vector<2xf32>
    %14 = vector.multi_reduction <maximumf>, %13, %cst_11 [1] : vector<2x10xf32> to vector<2xf32>
    %15 = vector.shape_cast %14 : vector<2xf32> to vector<2x1xf32>
    %16 = vector.broadcast %15 : vector<2x1xf32> to vector<2x10xf32>
    %17 = arith.subf %13, %16 : vector<2x10xf32>
    %18 = math.exp %17 : vector<2x10xf32>
    %cst_12 = arith.constant dense<0.000000e+00> : vector<2xf32>
    %19 = vector.multi_reduction <add>, %18, %cst_12 [1] : vector<2x10xf32> to vector<2xf32>
    %20 = vector.shape_cast %19 : vector<2xf32> to vector<2x1xf32>
    %21 = math.log %20 : vector<2x1xf32>
    %22 = vector.broadcast %21 : vector<2x1xf32> to vector<2x10xf32>
    %23 = arith.subf %17, %22 : vector<2x10xf32>
    %c0_13 = arith.constant 0 : index
    %c0_14 = arith.constant 0 : index
    %24 = vector.load %arg6[%c0_13, %c0_14] : memref<2x10xf32, #tpu.memory_space<vmem>>, vector<2x10xf32>
    tpu.vector_store %arg6[%c0_13, %c0_14], %23 {strides = array<i32>} : memref<2x10xf32, #tpu.memory_space<vmem>>, vector<2x10xf32>,
    return
  }
  func.func @transform_0(%arg0: i32) -> (i32, i32) {
    %c0_i32 = arith.constant 0 : i32
    %c0_i32_0 = arith.constant 0 : i32
    return %arg0, %c0_i32 : i32, i32
  }
  func.func @transform_1(%arg0: i32) -> (i32, i32) {
    %c0_i32 = arith.constant 0 : i32
    %c0_i32_0 = arith.constant 0 : i32
    %c0_i32_1 = arith.constant 0 : i32
    return %c0_i32, %c0_i32_0 : i32, i32
  }
  func.func @transform_2(%arg0: i32) -> (i32, i32) {
    %c0_i32 = arith.constant 0 : i32
    %c0_i32_0 = arith.constant 0 : i32
    %c0_i32_1 = arith.constant 0 : i32
    return %c0_i32, %c0_i32_0 : i32, i32
  }
  func.func @transform_3(%arg0: i32) -> (i32, i32) {
    %c0_i32 = arith.constant 0 : i32
    %c0_i32_0 = arith.constant 0 : i32
    %c0_i32_1 = arith.constant 0 : i32
    return %c0_i32, %c0_i32_0 : i32, i32
  }
  func.func @transform_4(%arg0: i32) -> (i32, i32) {
    %c0_i32 = arith.constant 0 : i32
    %c0_i32_0 = arith.constant 0 : i32
    %c0_i32_1 = arith.constant 0 : i32
    return %c0_i32, %c0_i32_0 : i32, i32
  }
  func.func @transform_5(%arg0: i32) -> (i32, i32) {
    %c0_i32 = arith.constant 0 : i32
    %c0_i32_0 = arith.constant 0 : i32
    return %arg0, %c0_i32 : i32, i32
  }
}

</mosaic_0001>

<bundles_post_ra>
// kernel: cnn_mnist_forward.3
= control target key start
LH: loop header
LB: loop body
LE: loop exit
PB: predicated region body
PF: predicated region fallthrough
CT: control target
= control target key end

     0   :  { %vm751_vm0 = vcmask 1043456   ;;  %vm752_vm1 = vcmask 1044480   ;;  %vm534_vm2 = vcmask 203776   ;;  %v2404_v1 = vmov 65535   ;;  %s3474_s1 = inlined_call_operand.vmem [shape: bf16[25,10], index: 1, kind: input, shape index: {}]   ;;  %s3475_s0 = inlined_call_operand.vmem [shape: bf16[4,288,25], index: 0, kind: input, shape index: {}]   ;;  %s3476_s2 = inlined_call_operand.vmem [shape: f32[1,10], index: 2, kind: input, shape index: {}]   ;;  %s3477_s3 = inlined_call_operand.vmem [shape: bf16[288,10], index: 3, kind: output, shape index: {}]  }
   0x1   :  { %v2330_v0 = vld [vmem:[%s3474_s1] sm:$0xff]   ;;  %v753_v2 = vsel %vm751_vm0, 4294967295, %v2404_v1  ;;  %v2331_v3 = vld [vmem:[%s3474_s1 + $0x8] sm:$0x1f]   ;;  %v2336_v10 = vld [vmem:[%s3475_s0 + $0x10] sm:$0xff]   ;;  %vm1367_vm3 = vcmask 80896  }
   0x2   :  { %2177 = vmatprep.subr.bf16.mxu0 %v2330_v0  ;;  %2325 = vmatprep.subr.bf16.mxu1 %v2330_v0  ;;  %v754_v4 = vsel %vm752_vm1, %v753_v2, 0  ;;  %v2332_v5 = vld [vmem:[%s3475_s0] sm:$0xff]   ;;  %v2333_v8 = vld [vmem:[%s3475_s0 + $0x8] sm:$0xff]   ;;  %v2338_v11 = vld [vmem:[%s3475_s0 + $0x130] sm:$0xff]   ;;  %vm1843_vm4 = vcmask 76800  }
   0x3   :  { %2178 = vmatpush3.bf16.msra.mxu0 %v2330_v0  ;;  %2327 = vmatpush3.bf16.msra.mxu1 %v2330_v0  ;;  %v756_v6 = vand.u32 %v2331_v3, %v754_v4  ;;  %v2334_v7 = vld [vmem:[%s3475_s0 + $0x120] sm:$0xff]   ;;  %v2335_v9 = vld [vmem:[%s3475_s0 + $0x128] sm:$0xff]   ;;  %v2337_v12 = vld [vmem:[%s3475_s0 + $0x18] sm:$0xff]  }
   0x4   :  { %2181 = vmatprep.mubr.msk.bf16.mxu0 %vm534_vm2, %v2332_v5  ;;  %2253 = vmatprep.mubr.msk.bf16.mxu1 %vm534_vm2, %v2334_v7  ;;  %v2339_v13 = vld [vmem:[%s3475_s0 + $0x138] sm:$0xff]   ;;  %v2340_v14 = vld [vmem:[%s3475_s0 + $0x20] sm:$0xff]   ;;  %v2341_v16 = vld [vmem:[%s3475_s0 + $0x28] sm:$0xff]  }
   0x5   :  { %2179 = vmatprep.subr.bf16.mxu0 %v756_v6  ;;  %2326 = vmatprep.subr.bf16.mxu1 %v756_v6  ;;  %v2342_v15 = vld [vmem:[%s3475_s0 + $0x140] sm:$0xff]   ;;  %v2343_v17 = vld [vmem:[%s3475_s0 + $0x148] sm:$0xff]   ;;  %v2344_v18 = vld [vmem:[%s3475_s0 + $0x30] sm:$0xff]  }
   0x6   :  { %v2346_v19 = vld [vmem:[%s3475_s0 + $0x150] sm:$0xff]   ;;  %v2345_v20 = vld [vmem:[%s3475_s0 + $0x38] sm:$0xff]   ;;  %v2348_v22 = vld [vmem:[%s3475_s0 + $0x40] sm:$0xff]  }
   0x7   :  { %2180 = vmatpush3.bf16.msra.mxu0 %v756_v6  ;;  %2328 = vmatpush3.bf16.msra.mxu1 %v756_v6  ;;  %v2347_v21 = vld [vmem:[%s3475_s0 + $0x158] sm:$0xff]   ;;  %v2350_v23 = vld [vmem:[%s3475_s0 + $0x160] sm:$0xff]   ;;  %v2349_v24 = vld [vmem:[%s3475_s0 + $0x48] sm:$0xff]  }
   0x8   :  { %v2351_v25 = vld [vmem:[%s3475_s0 + $0x168] sm:$0xff]   ;;  %v2352_v26 = vld [vmem:[%s3475_s0 + $0x50] sm:$0xff]   ;;  %v2353_v28 = vld [vmem:[%s3475_s0 + $0x58] sm:$0xff]  }
   0x9   :  { %v2354_v27 = vld [vmem:[%s3475_s0 + $0x170] sm:$0xff]   ;;  %v2355_v29 = vld [vmem:[%s3475_s0 + $0x178] sm:$0xff]   ;;  %v2356_v30 = vld [vmem:[%s3475_s0 + $0x60] sm:$0xff]  }
   0xa   :  { %2182 = vmatmul.mubr.msk.bf16.vlgmr.msra.gmra.mrb[0].mxu0 %vm534_vm2, %v2333_v8  ;;  %2254 = vmatmul.mubr.msk.bf16.vlgmr.msra.gmra.mrb[0].mxu1 %vm534_vm2, %v2335_v9  ;;  %v2358_v31 = vld [vmem:[%s3475_s0 + $0x180] sm:$0xff]   ;;  %v2357_v32 = vld [vmem:[%s3475_s0 + $0x68] sm:$0xff]   ;;  %v2360_v34 = vld [vmem:[%s3475_s0 + $0x70] sm:$0xff]  }
   0xb   :  { %2185 = vmatprep.mubr.msk.bf16.mxu0 %vm534_vm2, %v2336_v10  ;;  %2257 = vmatprep.mubr.msk.bf16.mxu1 %vm534_vm2, %v2338_v11  ;;  %v2359_v33 = vld [vmem:[%s3475_s0 + $0x188] sm:$0xff]   ;;  %v2362_v35 = vld [vmem:[%s3475_s0 + $0x190] sm:$0xff]   ;;  %v2361_v36 = vld [vmem:[%s3475_s0 + $0x78] sm:$0xff]  }
   0xc   :  { %v2363_v37 = vld [vmem:[%s3475_s0 + $0x198] sm:$0xff]   ;;  %v2364_v38 = vld [vmem:[%s3475_s0 + $0x80] sm:$0xff]   ;;  %v2365_v40 = vld [vmem:[%s3475_s0 + $0x88] sm:$0xff]  }
   0xd   :  { %v2366_v39 = vld [vmem:[%s3475_s0 + $0x1a0] sm:$0xff]   ;;  %v2367_v41 = vld [vmem:[%s3475_s0 + $0x1a8] sm:$0xff]   ;;  %v2368_v42 = vld [vmem:[%s3475_s0 + $0x90] sm:$0xff]  }
   0xe   :  { %v2370_v43 = vld [vmem:[%s3475_s0 + $0x1b0] sm:$0xff]   ;;  %v2369_v44 = vld [vmem:[%s3475_s0 + $0x98] sm:$0xff]   ;;  %v2372_v46 = vld [vmem:[%s3475_s0 + $0xa0] sm:$0xff]  }
   0xf   :  { %v2371_v45 = vld [vmem:[%s3475_s0 + $0x1b8] sm:$0xff]   ;;  %v2374_v47 = vld [vmem:[%s3475_s0 + $0x1c0] sm:$0xff]   ;;  %v2373_v48 = vld [vmem:[%s3475_s0 + $0xa8] sm:$0xff]  }
  0x10   :  { %v2375_v49 = vld [vmem:[%s3475_s0 + $0x1c8] sm:$0xff]   ;;  %v2376_v50 = vld [vmem:[%s3475_s0 + $0xb0] sm:$0xff]   ;;  %v2377_v52 = vld [vmem:[%s3475_s0 + $0xb8] sm:$0xff]  }
  0x11   :  { %v2378_v51 = vld [vmem:[%s3475_s0 + $0x1d0] sm:$0xff]   ;;  %v2379_v53 = vld [vmem:[%s3475_s0 + $0x1d8] sm:$0xff]   ;;  %v2380_v54 = vld [vmem:[%s3475_s0 + $0xc0] sm:$0xff]  }
  0x12   :  { %2186 = vmatmul.mubr.msk.bf16.gmra.mrb[4].mxu0 %vm534_vm2, %v2337_v12  ;;  %2258 = vmatmul.mubr.msk.bf16.gmra.mrb[4].mxu1 %vm534_vm2, %v2339_v13  ;;  %v2382_v55 = vld [vmem:[%s3475_s0 + $0x1e0] sm:$0xff]   ;;  %v2381_v56 = vld [vmem:[%s3475_s0 + $0xc8] sm:$0xff]   ;;  %v2384_v58 = vld [vmem:[%s3475_s0 + $0xd0] sm:$0xff]  }
  0x13   :  { %2189 = vmatprep.mubr.msk.bf16.mxu0 %vm534_vm2, %v2340_v14  ;;  %2261 = vmatprep.mubr.msk.bf16.mxu1 %vm534_vm2, %v2342_v15  ;;  %v2383_v57 = vld [vmem:[%s3475_s0 + $0x1e8] sm:$0xff]   ;;  %v2386_v59 = vld [vmem:[%s3475_s0 + $0x1f0] sm:$0xff]   ;;  %v2385_v60 = vld [vmem:[%s3475_s0 + $0xd8] sm:$0xff]  }
  0x14   :  { %v2387_v61 = vld [vmem:[%s3475_s0 + $0x1f8] sm:$0xff]   ;;  %v2388_v62 = vld [vmem:[%s3475_s0 + $0xe0] sm:$0xff]   ;;  %v2389_v0 = vld [vmem:[%s3475_s0 + $0xe8] sm:$0xff]  }
  0x15   :  { %v2390_v63 = vld [vmem:[%s3475_s0 + $0x200] sm:$0xff]   ;;  %v2391_v1 = vld [vmem:[%s3475_s0 + $0x208] sm:$0xff]   ;;  %v2392_v2 = vld [vmem:[%s3475_s0 + $0xf0] sm:$0xff]  }
  0x16   :  { %v2394_v3 = vld [vmem:[%s3475_s0 + $0x210] sm:$0xff]   ;;  %v2393_v4 = vld [vmem:[%s3475_s0 + $0xf8] sm:$0xff]   ;;  %v2396_v6 = vld [vmem:[%s3475_s0 + $0x100] sm:$0xff]  }
  0x17   :  { %v2395_v5 = vld [vmem:[%s3475_s0 + $0x218] sm:$0xff]   ;;  %v2398_v7 = vld [vmem:[%s3475_s0 + $0x220] sm:$0xff]   ;;  %v2397_v8 = vld [vmem:[%s3475_s0 + $0x108] sm:$0xff]  }
  0x18   :  { %v2399_v9 = vld [vmem:[%s3475_s0 + $0x228] sm:$0xff]   ;;  %v2400_v10 = vld [vmem:[%s3475_s0 + $0x110] sm:$0xff]   ;;  %v2401_v12 = vld [vmem:[%s3475_s0 + $0x118] sm:$0xff]  }
  0x19   :  { %v2402_v11 = vld [vmem:[%s3475_s0 + $0x230] sm:$0xff]   ;;  %v2403_v13 = vld [vmem:[%s3475_s0 + $0x238] sm:$0xff]  }
  0x1a   :  { %2190 = vmatmul.mubr.msk.bf16.gmra.mrb[8].mxu0 %vm534_vm2, %v2341_v16  ;;  %2262 = vmatmul.mubr.msk.bf16.gmra.mrb[8].mxu1 %vm534_vm2, %v2343_v17 }
  0x1b   :  { %2193 = vmatprep.mubr.msk.bf16.mxu0 %vm534_vm2, %v2344_v18  ;;  %2265 = vmatprep.mubr.msk.bf16.mxu1 %vm534_vm2, %v2346_v19 }
  0x22   :  { %2194 = vmatmul.mubr.msk.bf16.gmra.mrb[12].mxu0 %vm534_vm2, %v2345_v20  ;;  %2266 = vmatmul.mubr.msk.bf16.gmra.mrb[12].mxu1 %vm534_vm2, %v2347_v21 }
  0x23   :  { %2197 = vmatprep.mubr.msk.bf16.mxu0 %vm534_vm2, %v2348_v22  ;;  %2269 = vmatprep.mubr.msk.bf16.mxu1 %vm534_vm2, %v2350_v23 }
  0x2a   :  { %2198 = vmatmul.mubr.msk.bf16.gmra.mrb[16].mxu0 %vm534_vm2, %v2349_v24  ;;  %2270 = vmatmul.mubr.msk.bf16.gmra.mrb[16].mxu1 %vm534_vm2, %v2351_v25 }
  0x2b   :  { %2201 = vmatprep.mubr.msk.bf16.mxu0 %vm534_vm2, %v2352_v26  ;;  %2273 = vmatprep.mubr.msk.bf16.mxu1 %vm534_vm2, %v2354_v27 }
  0x32   :  { %2202 = vmatmul.mubr.msk.bf16.gmra.mrb[20].mxu0 %vm534_vm2, %v2353_v28  ;;  %2274 = vmatmul.mubr.msk.bf16.gmra.mrb[20].mxu1 %vm534_vm2, %v2355_v29 }
  0x33   :  { %2205 = vmatprep.mubr.msk.bf16.mxu0 %vm534_vm2, %v2356_v30  ;;  %2277 = vmatprep.mubr.msk.bf16.mxu1 %vm534_vm2, %v2358_v31 }
  0x3a   :  { %2206 = vmatmul.mubr.msk.bf16.gmra.mrb[24].mxu0 %vm534_vm2, %v2357_v32  ;;  %2278 = vmatmul.mubr.msk.bf16.gmra.mrb[24].mxu1 %vm534_vm2, %v2359_v33 }
  0x3b   :  { %2209 = vmatprep.mubr.msk.bf16.mxu0 %vm534_vm2, %v2360_v34  ;;  %2281 = vmatprep.mubr.msk.bf16.mxu1 %vm534_vm2, %v2362_v35 }
  0x42   :  { %2210 = vmatmul.mubr.msk.bf16.gmra.mrb[28].mxu0 %vm534_vm2, %v2361_v36  ;;  %2282 = vmatmul.mubr.msk.bf16.gmra.mrb[28].mxu1 %vm534_vm2, %v2363_v37 }
  0x43   :  { %2213 = vmatprep.mubr.msk.bf16.mxu0 %vm534_vm2, %v2364_v38  ;;  %2285 = vmatprep.mubr.msk.bf16.mxu1 %vm534_vm2, %v2366_v39 }
  0x4a   :  { %2214 = vmatmul.mubr.msk.bf16.gmra.mrb[32].mxu0 %vm534_vm2, %v2365_v40  ;;  %2286 = vmatmul.mubr.msk.bf16.gmra.mrb[32].mxu1 %vm534_vm2, %v2367_v41 }
  0x4b   :  { %2217 = vmatprep.mubr.msk.bf16.mxu0 %vm534_vm2, %v2368_v42  ;;  %2289 = vmatprep.mubr.msk.bf16.mxu1 %vm534_vm2, %v2370_v43 }
  0x52   :  { %2218 = vmatmul.mubr.msk.bf16.gmra.mrb[36].mxu0 %vm534_vm2, %v2369_v44  ;;  %2290 = vmatmul.mubr.msk.bf16.gmra.mrb[36].mxu1 %vm534_vm2, %v2371_v45 }
  0x53   :  { %2221 = vmatprep.mubr.msk.bf16.mxu0 %vm534_vm2, %v2372_v46  ;;  %2293 = vmatprep.mubr.msk.bf16.mxu1 %vm534_vm2, %v2374_v47 }
  0x5a   :  { %2222 = vmatmul.mubr.msk.bf16.gmra.mrb[40].mxu0 %vm534_vm2, %v2373_v48  ;;  %2294 = vmatmul.mubr.msk.bf16.gmra.mrb[40].mxu1 %vm534_vm2, %v2375_v49 }
  0x5b   :  { %2225 = vmatprep.mubr.msk.bf16.mxu0 %vm534_vm2, %v2376_v50  ;;  %2297 = vmatprep.mubr.msk.bf16.mxu1 %vm534_vm2, %v2378_v51 }
  0x62   :  { %2226 = vmatmul.mubr.msk.bf16.gmra.mrb[44].mxu0 %vm534_vm2, %v2377_v52  ;;  %2298 = vmatmul.mubr.msk.bf16.gmra.mrb[44].mxu1 %vm534_vm2, %v2379_v53 }
  0x63   :  { %2229 = vmatprep.mubr.msk.bf16.mxu0 %vm534_vm2, %v2380_v54  ;;  %2301 = vmatprep.mubr.msk.bf16.mxu1 %vm534_vm2, %v2382_v55 }
  0x6a   :  { %2230 = vmatmul.mubr.msk.bf16.gmra.mrb[48].mxu0 %vm534_vm2, %v2381_v56  ;;  %2302 = vmatmul.mubr.msk.bf16.gmra.mrb[48].mxu1 %vm534_vm2, %v2383_v57 }
  0x6b   :  { %2233 = vmatprep.mubr.msk.bf16.mxu0 %vm534_vm2, %v2384_v58  ;;  %2305 = vmatprep.mubr.msk.bf16.mxu1 %vm534_vm2, %v2386_v59 }
  0x72   :  { %2234 = vmatmul.mubr.msk.bf16.gmra.mrb[52].mxu0 %vm534_vm2, %v2385_v60  ;;  %2306 = vmatmul.mubr.msk.bf16.gmra.mrb[52].mxu1 %vm534_vm2, %v2387_v61 }
  0x73   :  { %2237 = vmatprep.mubr.msk.bf16.mxu0 %vm534_vm2, %v2388_v62  ;;  %2309 = vmatprep.mubr.msk.bf16.mxu1 %vm534_vm2, %v2390_v63 }
  0x7a   :  { %2238 = vmatmul.mubr.msk.bf16.gmra.mrb[56].mxu0 %vm534_vm2, %v2389_v0  ;;  %2310 = vmatmul.mubr.msk.bf16.gmra.mrb[56].mxu1 %vm534_vm2, %v2391_v1 }
  0x7b   :  { %2241 = vmatprep.mubr.msk.bf16.mxu0 %vm534_vm2, %v2392_v2  ;;  %2313 = vmatprep.mubr.msk.bf16.mxu1 %vm534_vm2, %v2394_v3 }
  0x82   :  { %2242 = vmatmul.mubr.msk.bf16.gmra.mrb[60].mxu0 %vm534_vm2, %v2393_v4  ;;  %2314 = vmatmul.mubr.msk.bf16.gmra.mrb[60].mxu1 %vm534_vm2, %v2395_v5 }
  0x83   :  { %2245 = vmatprep.mubr.msk.bf16.mxu0 %vm534_vm2, %v2396_v6  ;;  %2317 = vmatprep.mubr.msk.bf16.mxu1 %vm534_vm2, %v2398_v7 }
  0x8a   :  { %2246 = vmatmul.mubr.msk.bf16.gmra.mrb[64].mxu0 %vm534_vm2, %v2397_v8  ;;  %2318 = vmatmul.mubr.msk.bf16.gmra.mrb[64].mxu1 %vm534_vm2, %v2399_v9 }
  0x8b   :  { %2249 = vmatprep.mubr.msk.bf16.mxu0 %vm534_vm2, %v2400_v10  ;;  %2321 = vmatprep.mubr.msk.bf16.mxu1 %vm534_vm2, %v2402_v11 }
  0x92   :  { %2250 = vmatmul.mubr.msk.bf16.gmra.mrb[68].mxu0 %vm534_vm2, %v2401_v12  ;;  %2322 = vmatmul.mubr.msk.bf16.gmra.mrb[68].mxu1 %vm534_vm2, %v2403_v13 }
  0xdd   :  { %v2719_v14 = vpop.f32.mrb[0].mxu0  ;;  %v2721_v15 = vpop.f32.mrb[0].mxu1 }
  0xde   :  { %v792_v16 = vpop.f32.mrb[1].mxu0  ;;  %v2723_v17 = vpop.f32.mrb[1].mxu1  ;;  %v2843_v12 = vsel %vm1367_vm3, %v2719_v14, -inf }
  0xdf   :  { %v2725_v18 = vpop.f32.mrb[2].mxu0  ;;  %v2727_v19 = vpop.f32.mrb[2].mxu1  ;;  %v2846_v13 = vsel %vm1367_vm3, %v792_v16, -inf }
  0xe0   :  { %v2729_v20 = vpop.f32.mrb[3].mxu0  ;;  %v2731_v21 = vpop.f32.mrb[3].mxu1 }
  0xe1   :  { %v2866_v14 = vsel %vm1367_vm3, %v2729_v20, -inf  ;;  %v2874_v16 = vsel %vm1367_vm3, %v2731_v21, -inf }
  0xe5   :  { %v2733_v22 = vpop.f32.mrb[4].mxu0  ;;  %v2735_v23 = vpop.f32.mrb[4].mxu1 }
  0xe6   :  { %v2737_v24 = vpop.f32.mrb[5].mxu0  ;;  %v2739_v25 = vpop.f32.mrb[5].mxu1  ;;  %v2886_v20 = vsel %vm1367_vm3, %v2735_v23, -inf }
  0xe7   :  { %v2741_v26 = vpop.f32.mrb[6].mxu0  ;;  %v2743_v27 = vpop.f32.mrb[6].mxu1  ;;  %v2894_v21 = vsel %vm1367_vm3, %v2739_v25, -inf }
  0xe8   :  { %v2745_v28 = vpop.f32.mrb[7].mxu0  ;;  %v2747_v29 = vpop.f32.mrb[7].mxu1 }
  0xe9   :  { %v2906_v23 = vsel %vm1367_vm3, %v2747_v29, -inf }
  0xed   :  { %v2749_v30 = vpop.f32.mrb[8].mxu0  ;;  %v2751_v31 = vpop.f32.mrb[8].mxu1 }
  0xee   :  { %v2753_v32 = vpop.f32.mrb[9].mxu0  ;;  %v2755_v33 = vpop.f32.mrb[9].mxu1 }
  0xef   :  { %v2757_v34 = vpop.f32.mrb[10].mxu0  ;;  %v2759_v35 = vpop.f32.mrb[10].mxu1  ;;  %v2914_v25 = vsel %vm1367_vm3, %v2753_v32, -inf  ;;  %v2926_v29 = vsel %vm1367_vm3, %v2755_v33, -inf }
  0xf0   :  { %v2761_v36 = vpop.f32.mrb[11].mxu0  ;;  %v2763_v37 = vpop.f32.mrb[11].mxu1  ;;  %3483 = vst [vmem:[#allocation7_spill] sm:$0xff] %v2914_v25  ;;  %v2934_v32 = vsel %vm1367_vm3, %v2759_v35, -inf }
  0xf1   :  { %3485 = vst [vmem:[#allocation9_spill] sm:$0xff] %v2934_v32 }
  0xf5   :  { %v2765_v38 = vpop.f32.mrb[12].mxu0  ;;  %v2767_v39 = vpop.f32.mrb[12].mxu1 }
  0xf6   :  { %v2769_v40 = vpop.f32.mrb[13].mxu0  ;;  %v2771_v41 = vpop.f32.mrb[13].mxu1  ;;  %v2946_v33 = vsel %vm1367_vm3, %v2765_v38, -inf  ;;  %v2954_v35 = vsel %vm1367_vm3, %v2767_v39, -inf }
  0xf7   :  { %v2773_v42 = vpop.f32.mrb[14].mxu0  ;;  %v2775_v43 = vpop.f32.mrb[14].mxu1  ;;  %3487 = vst [vmem:[#allocation11_spill] sm:$0xff] %v2954_v35  ;;  %v2966_v38 = vsel %vm1367_vm3, %v2771_v41, -inf }
  0xf8   :  { %v2777_v44 = vpop.f32.mrb[15].mxu0  ;;  %v2779_v45 = vpop.f32.mrb[15].mxu1  ;;  %v2974_v39 = vsel %vm1367_vm3, %v2775_v43, -inf }
  0xf9   :  { %3489 = vst [vmem:[#allocation13_spill] sm:$0xff] %v2974_v39 }
  0xfd   :  { %v2781_v46 = vpop.f32.mrb[16].mxu0  ;;  %v2783_v47 = vpop.f32.mrb[16].mxu1 }
  0xfe   :  { %v2785_v48 = vpop.f32.mrb[17].mxu0  ;;  %v2787_v49 = vpop.f32.mrb[17].mxu1  ;;  %v2986_v41 = vsel %vm1367_vm3, %v2781_v46, -inf  ;;  %v2994_v43 = vsel %vm1367_vm3, %v2783_v47, -inf }
  0xff   :  { %v2789_v50 = vpop.f32.mrb[18].mxu0  ;;  %v2791_v51 = vpop.f32.mrb[18].mxu1  ;;  %v3006_v46 = vsel %vm1367_vm3, %v2787_v49, -inf }
 0x100   :  { %v2793_v52 = vpop.f32.mrb[19].mxu0  ;;  %v2795_v53 = vpop.f32.mrb[19].mxu1  ;;  %v3014_v47 = vsel %vm1367_vm3, %v2791_v51, -inf }
 0x105   :  { %v2797_v54 = vpop.f32.mrb[20].mxu0  ;;  %v2799_v55 = vpop.f32.mrb[20].mxu1 }
 0x106   :  { %v2801_v56 = vpop.f32.mrb[21].mxu0  ;;  %v2803_v57 = vpop.f32.mrb[21].mxu1 }
 0x107   :  { %v2805_v58 = vpop.f32.mrb[22].mxu0  ;;  %v2807_v59 = vpop.f32.mrb[22].mxu1  ;;  %v3026_v49 = vsel %vm1367_vm3, %v2801_v56, -inf }
 0x108   :  { %v2809_v60 = vpop.f32.mrb[23].mxu0  ;;  %v2811_v61 = vpop.f32.mrb[23].mxu1  ;;  %v3034_v51 = vsel %vm1367_vm3, %v2805_v58, -inf  ;;  %v3046_v56 = vsel %vm1367_vm3, %v2807_v59, -inf }
 0x10d   :  { %v2813_v62 = vpop.f32.mrb[24].mxu0  ;;  %v2815_v63 = vpop.f32.mrb[24].mxu1 }
 0x10e   :  { %v2817_v0 = vpop.f32.mrb[25].mxu0  ;;  %v2819_v1 = vpop.f32.mrb[25].mxu1  ;;  %v3054_v58 = vsel %vm1367_vm3, %v2813_v62, -inf }
 0x10f   :  { %v2821_v2 = vpop.f32.mrb[26].mxu0  ;;  %v2823_v3 = vpop.f32.mrb[26].mxu1  ;;  %3493 = vst [vmem:[#allocation17_spill] sm:$0xff] %v3054_v58 }
 0x110   :  { %v2825_v4 = vpop.f32.mrb[27].mxu0  ;;  %v2827_v5 = vpop.f32.mrb[27].mxu1  ;;  %v3066_v59 = vsel %vm1367_vm3, %v2821_v2, -inf }
 0x111   :  { %3496 = vst [vmem:[#allocation20_spill] sm:$0xff] %v3066_v59  ;;  %v3074_v62 = vsel %vm1367_vm3, %v2825_v4, -inf }
 0x112   :  { %3498 = vst [vmem:[#allocation22_spill] sm:$0xff] %v3074_v62 }
 0x115   :  { %v2829_v6 = vpop.f32.mrb[28].mxu0  ;;  %v2831_v7 = vpop.f32.mrb[28].mxu1 }
 0x116   :  { %3478 = vst [vmem:[#allocation2_spill] sm:$0xff] %v2829_v6  ;;  %3479 = vst [vmem:[#allocation3_spill] sm:$0xff] %v2831_v7  ;;  %v2833_v8 = vpop.f32.mrb[29].mxu0  ;;  %v2835_v9 = vpop.f32.mrb[29].mxu1  ;;  %v2850_v6 = vsel %vm1367_vm3, %v2721_v15, -inf  ;;  %v2870_v15 = vsel %vm1367_vm3, %v2727_v19, -inf }
 0x117   :  { %3480 = vst [vmem:[#allocation4_spill] sm:$0xff] %v2833_v8  ;;  %v2837_v10 = vpop.f32.mrb[30].mxu0  ;;  %v2839_v11 = vpop.f32.mrb[30].mxu1  ;;  %v2890_v19 = vsel %vm1367_vm3, %v2741_v26, -inf  ;;  %v2910_v26 = vsel %vm1367_vm3, %v2749_v30, -inf  ;;  %v2930_v30 = vsel %vm1367_vm3, %v2761_v36, -inf }
 0x118   :  { %3481 = vst [vmem:[#allocation5_spill] sm:$0xff] %v2837_v10  ;;  %3482 = vst [vmem:[#allocation6_spill] sm:$0xff] %v2839_v11  ;;  %v2852_v7 = vpop.f32.mrb[31].mxu0  ;;  %v2854_v8 = vpop.f32.mrb[31].mxu1  ;;  %v2858_v10 = vsel %vm1367_vm3, %v2725_v18, -inf  ;;  %v2862_v11 = vsel %vm1367_vm3, %v2723_v17, -inf }
 0x119   :  { %v2878_v18 = vsel %vm1367_vm3, %v2733_v22, -inf  ;;  %v2882_v17 = vsel %vm1367_vm3, %v2737_v24, -inf  ;;  %v2898_v22 = vsel %vm1367_vm3, %v2745_v28, -inf  ;;  %v2902_v24 = vsel %vm1367_vm3, %v2743_v27, -inf  ;;  %3484 = vst [vmem:[#allocation8_spill] sm:$0xff] %v2930_v30 }
 0x11a   :  { %v2918_v28 = vsel %vm1367_vm3, %v2751_v31, -inf  ;;  %v2922_v27 = vsel %vm1367_vm3, %v2757_v34, -inf  ;;  %v2942_v34 = vsel %vm1367_vm3, %v2763_v37, -inf  ;;  %v2950_v36 = vsel %vm1367_vm3, %v2769_v40, -inf }
 0x11b   :  { %3486 = vst [vmem:[#allocation10_spill] sm:$0xff] %v2950_v36  ;;  %v2962_v37 = vsel %vm1367_vm3, %v2773_v42, -inf  ;;  %v2970_v40 = vsel %vm1367_vm3, %v2777_v44, -inf  ;;  %v2982_v42 = vsel %vm1367_vm3, %v2779_v45, -inf  ;;  %v2990_v44 = vsel %vm1367_vm3, %v2785_v48, -inf }
 0x11c   :  { %3488 = vst [vmem:[#allocation12_spill] sm:$0xff] %v2970_v40  ;;  %v3002_v45 = vsel %vm1367_vm3, %v2789_v50, -inf  ;;  %v3010_v48 = vsel %vm1367_vm3, %v2793_v52, -inf  ;;  %v3022_v50 = vsel %vm1367_vm3, %v2797_v54, -inf  ;;  %v3030_v52 = vsel %vm1367_vm3, %v2799_v55, -inf }
 0x11d   :  { %v2936_v25 = vpop.f32.mrb[32].mxu0  ;;  %v2938_v31 = vpop.f32.mrb[32].mxu1  ;;  %v3042_v54 = vsel %vm1367_vm3, %v2809_v60, -inf  ;;  %v3050_v55 = vsel %vm1367_vm3, %v2811_v61, -inf  ;;  %v3062_v60 = vsel %vm1367_vm3, %v2815_v63, -inf  ;;  %v3070_v61 = vsel %vm1367_vm3, %v2819_v1, -inf }
 0x11e   :  { %v2956_v30 = vpop.f32.mrb[33].mxu0  ;;  %v2958_v32 = vpop.f32.mrb[33].mxu1  ;;  %3492 = vst [vmem:[#allocation16_spill] sm:$0xff] %v3050_v55  ;;  %3495 = vst [vmem:[#allocation19_spill] sm:$0xff] %v3062_v60  ;;  %v3082_v63 = vsel %vm1367_vm3, %v2827_v5, -inf  ;;  %v3501_v2 = vld [vmem:[#allocation2_spill] sm:$0xff] }
 0x11f   :  { %v2976_v35 = vpop.f32.mrb[34].mxu0  ;;  %v2978_v36 = vpop.f32.mrb[34].mxu1  ;;  %3497 = vst [vmem:[#allocation21_spill] sm:$0xff] %v3070_v61  ;;  %3500 = vst [vmem:[#allocation24_spill] sm:$0xff] %v3082_v63  ;;  %v3086_v59 = vsel %vm1367_vm3, %v3501_v2, -inf  ;;  %v3503_v1 = vld [vmem:[#allocation3_spill] sm:$0xff] }
 0x120   :  { %v2996_v39 = vpop.f32.mrb[35].mxu0  ;;  %v2998_v40 = vpop.f32.mrb[35].mxu1  ;;  %3502 = vst [vmem:[#allocation2_spill] sm:$0xff] %v3086_v59  ;;  %v3090_v61 = vsel %vm1367_vm3, %v3503_v1, -inf  ;;  %v3099_v5 = vsel %vm1367_vm3, %v2835_v9, -inf  ;;  %v3508_v1 = vld [vmem:[#allocation5_spill] sm:$0xff] }
 0x121   :  { %3490 = vst [vmem:[#allocation14_spill] sm:$0xff] %v2996_v39  ;;  %3491 = vst [vmem:[#allocation15_spill] sm:$0xff] %v2998_v40  ;;  %v3018_v39 = vsel %vm1367_vm3, %v2795_v53, -inf  ;;  %v3038_v53 = vsel %vm1367_vm3, %v2803_v57, -inf  ;;  %v3058_v57 = vsel %vm1367_vm3, %v2817_v0, -inf  ;;  %v3078_v0 = vsel %vm1367_vm3, %v2823_v3, -inf }
 0x122   :  { %3494 = vst [vmem:[#allocation18_spill] sm:$0xff] %v3058_v57  ;;  %3499 = vst [vmem:[#allocation23_spill] sm:$0xff] %v3078_v0  ;;  %v3505_v3 = vld [vmem:[#allocation4_spill] sm:$0xff] }
 0x123   :  { %3504 = vst [vmem:[#allocation3_spill] sm:$0xff] %v3090_v61  ;;  %v3095_v0 = vsel %vm1367_vm3, %v3505_v3, -inf  ;;  %3507 = vst [vmem:[#allocation25_spill] sm:$0xff] %v3099_v5  ;;  %v3105_v61 = vsel %vm1367_vm3, %v3508_v1, -inf  ;;  %v3116_v1 = vsel %vm1367_vm3, %v2852_v7, -inf  ;;  %v3135_v7 = vsel %vm1367_vm3, %v2936_v25, -inf }
 0x124   :  { %3506 = vst [vmem:[#allocation4_spill] sm:$0xff] %v3095_v0 }
 0x125   :  { %v2219_v40 = vpop.f32.mrb[36].mxu0  ;;  %v2291_v57 = vpop.f32.mrb[36].mxu1 }
 0x126   :  { %v1383_v4 = vsel %vm1367_vm3, %v2219_v40, -inf  ;;  %v936_v62 = vpop.f32.mrb[37].mxu0  ;;  %v1224_v60 = vpop.f32.mrb[37].mxu1  ;;  %v1387_v55 = vsel %vm1367_vm3, %v2291_v57, -inf }
 0x127   :  { %v1384_v63 = vmax.f32 %v2843_v12, %v1383_v4  ;;  %v1369_v2 = vsel %vm1367_vm3, %v936_v62, -inf  ;;  %v2220_v59 = vpop.f32.mrb[38].mxu0  ;;  %v2292_v58 = vpop.f32.mrb[38].mxu1  ;;  %v1373_v62 = vsel %vm1367_vm3, %v1224_v60, -inf  ;;  %v3131_v60 = vsel %vm1367_vm3, %v2854_v8, -inf }
 0x128   :  { %v1370_v40 = vmax.f32 %v2846_v13, %v1369_v2  ;;  %v1390_v3 = vsel %vm1367_vm3, %v2220_v59, -inf  ;;  %v939_v0 = vpop.f32.mrb[39].mxu0  ;;  %v1227_v9 = vpop.f32.mrb[39].mxu1  ;;  %v3509_v13 = vld [vmem:[#allocation6_spill] sm:$0xff]  ;;  %v3140_v2 = vsel %vm1367_vm3, %v2938_v31, -inf  ;;  %v3146_v8 = vsel %vm1367_vm3, %v2956_v30, -inf }
 0x129   :  { %v1386_v5 = vmax.f32 %v1384_v63, %v2850_v6  ;;  %v1391_v12 = vmax.f32 %v2858_v10, %v1390_v3  ;;  %v1376_v4 = vsel %vm1367_vm3, %v939_v0, -inf  ;;  %v3120_v57 = vsel %vm1367_vm3, %v3509_v13, -inf  ;;  %v3125_v59 = vld [vmem:[%s3476_s2] ss:$0 sm:$0xff]  ;;  %3510 = vst [vmem:[#allocation5_spill] sm:$0xff] %v3140_v2 }
 0x12a   :  { %v1372_v6 = vmax.f32 %v1370_v40, %v2862_v11  ;;  %v1377_v10 = vmax.f32 %v2866_v14, %v1376_v4  ;;  %v1394_v11 = vsel %vm1367_vm3, %v2292_v58, -inf }
 0x12b   :  { %v1388_v0 = vmax.f32 %v1386_v5, %v1387_v55  ;;  %v1393_v63 = vmax.f32 %v1391_v12, %v2870_v15  ;;  %v1380_v55 = vsel %vm1367_vm3, %v1227_v9, -inf }
 0x12c   :  { %v1374_v3 = vmax.f32 %v1372_v6, %v1373_v62  ;;  %v1379_v14 = vmax.f32 %v1377_v10, %v2874_v16 }
 0x12d   :  { %v1629_v40 = vadd.f32 %v3125_v59, %v1388_v0  ;;  %v1395_v25 = vmax.f32 %v1393_v63, %v1394_v11  ;;  %v2223_v5 = vpop.f32.mrb[40].mxu0  ;;  %v2295_v15 = vpop.f32.mrb[40].mxu1 }
 0x12e   :  { %v1627_v12 = vadd.f32 %v3125_v59, %v1374_v3  ;;  %v1381_v31 = vmax.f32 %v1379_v14, %v1380_v55  ;;  %v1411_v62 = vsel %vm1367_vm3, %v2223_v5, -inf  ;;  %v952_v4 = vpop.f32.mrb[41].mxu0  ;;  %v1415_v58 = vsel %vm1367_vm3, %v2295_v15, -inf  ;;  %v1240_v16 = vpop.f32.mrb[41].mxu1 }
 0x12f   :  { %v1665_v13 = vmax.f32 %v1629_v40, 0.0  ;;  %v1630_v30 = vadd.f32 %v3125_v59, %v1395_v25  ;;  %v1412_v6 = vmax.f32 %v2878_v18, %v1411_v62  ;;  %v1397_v10 = vsel %vm1367_vm3, %v952_v4, -inf  ;;  %v2224_v0 = vpop.f32.mrb[42].mxu0  ;;  %v2296_v9 = vpop.f32.mrb[42].mxu1 }
 0x130   :  { %v1663_v63 = vmax.f32 %v1627_v12, 0.0  ;;  %v1628_v11 = vadd.f32 %v3125_v59, %v1381_v31  ;;  %v1398_v3 = vmax.f32 %v2882_v17, %v1397_v10  ;;  %v1418_v14 = vsel %vm1367_vm3, %v2224_v0, -inf  ;;  %v955_v55 = vpop.f32.mrb[43].mxu0  ;;  %v1243_v5 = vpop.f32.mrb[43].mxu1 }
 0x131   :  { %v2069_v15 = vpack.c.bf16 %v1665_v13, %v1665_v13  ;;  %v1666_v2 = vmax.f32 %v1630_v30, 0.0  ;;  %v1414_v40 = vmax.f32 %v1412_v6, %v2886_v20  ;;  %v1419_v25 = vmax.f32 %v2890_v19, %v1418_v14 }
 0x132   :  { %v2067_v18 = vpack.c.bf16 %v1663_v63, %v1663_v63  ;;  %v1664_v62 = vmax.f32 %v1628_v11, 0.0  ;;  %v1400_v4 = vmax.f32 %v1398_v3, %v2894_v21  ;;  %v1401_v12 = vsel %vm1367_vm3, %v1240_v16, -inf }
 0x133   :  { %1846 = vst.msk [vmem:[%s3477_s3 + $0x8] sm:$0xf] %vm1843_vm4, %v2069_v15  ;;  %v2070_v17 = vpack.c.bf16 %v1666_v2, %v1666_v2  ;;  %v1416_v31 = vmax.f32 %v1414_v40, %v1415_v58  ;;  %v1404_v13 = vsel %vm1367_vm3, %v955_v55, -inf  ;;  %v1421_v30 = vmax.f32 %v1419_v25, %v2902_v24 }
 0x134   :  { %1844 = vst.msk [vmem:[%s3477_s3] sm:$0xf] %vm1843_vm4, %v2067_v18  ;;  %v2068_v20 = vpack.c.bf16 %v1664_v62, %v1664_v62  ;;  %v1402_v19 = vmax.f32 %v1400_v4, %v1401_v12  ;;  %v1405_v21 = vmax.f32 %v2898_v22, %v1404_v13  ;;  %v1422_v16 = vsel %vm1367_vm3, %v2296_v9, -inf  ;;  %v3511_v4 = vld [vmem:[#allocation7_spill] sm:$0xff] }
 0x135   :  { %v3177_v6 = vsel %vm1367_vm3, %v2958_v32, -inf  ;;  %1847 = vst.msk [vmem:[%s3477_s3 + $0xc] sm:$0xf] %vm1843_vm4, %v2070_v17  ;;  %v1633_v24 = vadd.f32 %v3125_v59, %v1416_v31  ;;  %v1423_v2 = vmax.f32 %v1421_v30, %v1422_v16  ;;  %v1408_v58 = vsel %vm1367_vm3, %v1243_v5, -inf  ;;  %v2227_v10 = vpop.f32.mrb[44].mxu0  ;;  %v2299_v0 = vpop.f32.mrb[44].mxu1 }
 0x136   :  { %1845 = vst.msk [vmem:[%s3477_s3 + $0x4] sm:$0xf] %vm1843_vm4, %v2068_v20  ;;  %v1631_v22 = vadd.f32 %v3125_v59, %v1402_v19  ;;  %v1407_v32 = vmax.f32 %v1405_v21, %v2906_v23  ;;  %v1439_v9 = vsel %vm1367_vm3, %v2227_v10, -inf  ;;  %v968_v63 = vpop.f32.mrb[45].mxu0  ;;  %v1443_v11 = vsel %vm1367_vm3, %v2299_v0, -inf  ;;  %v1256_v3 = vpop.f32.mrb[45].mxu1 }
 0x137   :  { %v1669_v14 = vmax.f32 %v1633_v24, 0.0  ;;  %v1634_v55 = vadd.f32 %v3125_v59, %v1423_v2  ;;  %v1440_v5 = vmax.f32 %v2910_v26, %v1439_v9  ;;  %v1425_v15 = vsel %vm1367_vm3, %v968_v63, -inf  ;;  %v2228_v40 = vpop.f32.mrb[46].mxu0  ;;  %v2300_v25 = vpop.f32.mrb[46].mxu1  ;;  %v3512_v0 = vld [vmem:[#allocation9_spill] sm:$0xff] }
 0x138   :  { %v1667_v18 = vmax.f32 %v1631_v22, 0.0  ;;  %v1409_v62 = vmax.f32 %v1407_v32, %v1408_v58  ;;  %v1426_v12 = vmax.f32 %v3511_v4, %v1425_v15  ;;  %v1446_v23 = vsel %vm1367_vm3, %v2228_v40, -inf  ;;  %v971_v17 = vpop.f32.mrb[47].mxu0  ;;  %v1259_v31 = vpop.f32.mrb[47].mxu1  ;;  %v3513_v22 = vld [vmem:[#allocation8_spill] sm:$0xff] }
 0x139   :  { %v2073_v13 = vpack.c.bf16 %v1669_v14, %v1669_v14  ;;  %v1670_v30 = vmax.f32 %v1634_v55, 0.0  ;;  %v1442_v20 = vmax.f32 %v1440_v5, %v2918_v28  ;;  %v1447_v19 = vmax.f32 %v2922_v27, %v1446_v23 }
 0x13a   :  { %v2071_v21 = vpack.c.bf16 %v1667_v18, %v1667_v18  ;;  %v1632_v26 = vadd.f32 %v3125_v59, %v1409_v62  ;;  %v1428_v16 = vmax.f32 %v1426_v12, %v2926_v29  ;;  %v1429_v24 = vsel %vm1367_vm3, %v1256_v3, -inf }
 0x13b   :  { %1850 = vst.msk [vmem:[%s3477_s3 + $0x18] sm:$0xf] %vm1843_vm4, %v2073_v13  ;;  %v2074_v2 = vpack.c.bf16 %v1670_v30, %v1670_v30  ;;  %v1444_v58 = vmax.f32 %v1442_v20, %v1443_v11  ;;  %v1432_v10 = vsel %vm1367_vm3, %v971_v17, -inf  ;;  %v1449_v28 = vmax.f32 %v1447_v19, %v3512_v0  ;;  %v3514_v20 = vld [vmem:[#allocation10_spill] sm:$0xff] }
 0x13c   :  { %1848 = vst.msk [vmem:[%s3477_s3 + $0x10] sm:$0xf] %vm1843_vm4, %v2071_v21  ;;  %v1668_v27 = vmax.f32 %v1632_v26, 0.0  ;;  %v1430_v29 = vmax.f32 %v1428_v16, %v1429_v24  ;;  %v1433_v32 = vmax.f32 %v3513_v22, %v1432_v10  ;;  %v1450_v9 = vsel %vm1367_vm3, %v2300_v25, -inf }
 0x13d   :  { %v3217_v63 = vsel %vm1367_vm3, %v2976_v35, -inf  ;;  %1851 = vst.msk [vmem:[%s3477_s3 + $0x1c] sm:$0xf] %vm1843_vm4, %v2074_v2  ;;  %v1637_v11 = vadd.f32 %v3125_v59, %v1444_v58  ;;  %v1451_v3 = vmax.f32 %v1449_v28, %v1450_v9  ;;  %v1436_v14 = vsel %vm1367_vm3, %v1259_v31, -inf  ;;  %v2231_v55 = vpop.f32.mrb[48].mxu0  ;;  %v2303_v5 = vpop.f32.mrb[48].mxu1 }
 0x13e   :  { %v2072_v15 = vpack.c.bf16 %v1668_v27, %v1668_v27  ;;  %v1635_v40 = vadd.f32 %v3125_v59, %v1430_v29  ;;  %v1435_v25 = vmax.f32 %v1433_v32, %v2942_v34  ;;  %v1467_v35 = vsel %vm1367_vm3, %v2231_v55, -inf  ;;  %v984_v18 = vpop.f32.mrb[49].mxu0  ;;  %v1272_v62 = vpop.f32.mrb[49].mxu1  ;;  %v3517_v55 = vld [vmem:[#allocation13_spill] sm:$0xff] }
 0x13f   :  { %v1673_v4 = vmax.f32 %v1637_v11, 0.0  ;;  %v1638_v12 = vadd.f32 %v3125_v59, %v1451_v3  ;;  %v1468_v23 = vmax.f32 %v2946_v33, %v1467_v35  ;;  %v1453_v17 = vsel %vm1367_vm3, %v984_v18, -inf  ;;  %v2232_v13 = vpop.f32.mrb[50].mxu0  ;;  %v2304_v31 = vpop.f32.mrb[50].mxu1  ;;  %v3515_v33 = vld [vmem:[#allocation11_spill] sm:$0xff] }
 0x140   :  { %1849 = vst.msk [vmem:[%s3477_s3 + $0x14] sm:$0xf] %vm1843_vm4, %v2072_v15  ;;  %v1671_v30 = vmax.f32 %v1635_v40, 0.0  ;;  %v1437_v34 = vmax.f32 %v1435_v25, %v1436_v14  ;;  %v1454_v19 = vmax.f32 %v3514_v20, %v1453_v17  ;;  %v1471_v21 = vsel %vm1367_vm3, %v2303_v5, -inf  ;;  %v987_v26 = vpop.f32.mrb[51].mxu0  ;;  %v1275_v16 = vpop.f32.mrb[51].mxu1 }
 0x141   :  { %v2077_v24 = vpack.c.bf16 %v1673_v4, %v1673_v4  ;;  %v1674_v2 = vmax.f32 %v1638_v12, 0.0  ;;  %v1470_v58 = vmax.f32 %v1468_v23, %v3515_v33  ;;  %v1474_v10 = vsel %vm1367_vm3, %v2232_v13, -inf  ;;  %v3516_v14 = vld [vmem:[#allocation12_spill] sm:$0xff] }
 0x142   :  { %v2075_v0 = vpack.c.bf16 %v1671_v30, %v1671_v30  ;;  %v1636_v28 = vadd.f32 %v3125_v59, %v1437_v34  ;;  %v1475_v27 = vmax.f32 %v2962_v37, %v1474_v10  ;;  %v1456_v29 = vmax.f32 %v1454_v19, %v2966_v38 }
 0x143   :  { %1854 = vst.msk [vmem:[%s3477_s3 + $0x28] sm:$0xf] %vm1843_vm4, %v2077_v24  ;;  %v2078_v22 = vpack.c.bf16 %v1674_v2, %v1674_v2  ;;  %v1472_v32 = vmax.f32 %v1470_v58, %v1471_v21  ;;  %v1457_v9 = vsel %vm1367_vm3, %v1272_v62, -inf  ;;  %v1460_v11 = vsel %vm1367_vm3, %v987_v26, -inf }
 0x144   :  { %1852 = vst.msk [vmem:[%s3477_s3 + $0x20] sm:$0xf] %vm1843_vm4, %v2075_v0  ;;  %v1672_v3 = vmax.f32 %v1636_v28, 0.0  ;;  %v1458_v37 = vmax.f32 %v1456_v29, %v1457_v9  ;;  %v1461_v38 = vmax.f32 %v3516_v14, %v1460_v11  ;;  %v1477_v5 = vmax.f32 %v1475_v27, %v3517_v55  ;;  %v3518_v9 = vld [vmem:[#allocation14_spill] sm:$0xff] }
 0x145   :  { %v3256_v15 = vsel %vm1367_vm3, %v2978_v36, -inf  ;;  %1855 = vst.msk [vmem:[%s3477_s3 + $0x2c] sm:$0xf] %vm1843_vm4, %v2078_v22  ;;  %v1641_v40 = vadd.f32 %v3125_v59, %v1472_v32  ;;  %v1478_v25 = vsel %vm1367_vm3, %v2304_v31, -inf  ;;  %v1464_v35 = vsel %vm1367_vm3, %v1275_v16, -inf  ;;  %v2235_v18 = vpop.f32.mrb[52].mxu0 }
 0x146   :  { %v2307_v62 = vpop.f32.mrb[52].mxu1  ;;  %v2076_v4 = vpack.c.bf16 %v1672_v3, %v1672_v3  ;;  %v1639_v12 = vadd.f32 %v3125_v59, %v1458_v37  ;;  %v1479_v23 = vmax.f32 %v1477_v5, %v1478_v25  ;;  %v1463_v36 = vmax.f32 %v1461_v38, %v2982_v42  ;;  %v1000_v17 = vpop.f32.mrb[53].mxu0 }
 0x147   :  { %v1288_v13 = vpop.f32.mrb[53].mxu1  ;;  %v1677_v30 = vmax.f32 %v1641_v40, 0.0  ;;  %v1495_v34 = vsel %vm1367_vm3, %v2235_v18, -inf  ;;  %v1481_v20 = vsel %vm1367_vm3, %v1000_v17, -inf  ;;  %v1499_v19 = vsel %vm1367_vm3, %v2307_v62, -inf  ;;  %v2236_v31 = vpop.f32.mrb[54].mxu0 }
 0x148   :  { %v2308_v21 = vpop.f32.mrb[54].mxu1  ;;  %1853 = vst.msk [vmem:[%s3477_s3 + $0x24] sm:$0xf] %vm1843_vm4, %v2076_v4  ;;  %v1675_v26 = vmax.f32 %v1639_v12, 0.0  ;;  %v1642_v16 = vadd.f32 %v3125_v59, %v1479_v23  ;;  %v1465_v42 = vmax.f32 %v1463_v36, %v1464_v35  ;;  %v1496_v24 = vmax.f32 %v2986_v41, %v1495_v34  ;;  %v1003_v2 = vpop.f32.mrb[55].mxu0 }
 0x149   :  { %v1291_v33 = vpop.f32.mrb[55].mxu1  ;;  %v2081_v58 = vpack.c.bf16 %v1677_v30, %v1677_v30  ;;  %v1482_v10 = vmax.f32 %v2990_v44, %v1481_v20  ;;  %v1502_v0 = vsel %vm1367_vm3, %v2236_v31, -inf  ;;  %v1485_v28 = vsel %vm1367_vm3, %v1288_v13, -inf }
 0x14a   :  { %v2079_v27 = vpack.c.bf16 %v1675_v26, %v1675_v26  ;;  %v1678_v29 = vmax.f32 %v1642_v16, 0.0  ;;  %v1640_v22 = vadd.f32 %v3125_v59, %v1465_v42  ;;  %v1498_v32 = vmax.f32 %v1496_v24, %v2994_v43 }
 0x14b   :  { %v3283_v11 = vsel %vm1367_vm3, %v3518_v9, -inf  ;;  %1858 = vst.msk [vmem:[%s3477_s3 + $0x38] sm:$0xf] %vm1843_vm4, %v2081_v58  ;;  %v1503_v41 = vmax.f32 %v3002_v45, %v1502_v0  ;;  %v1484_v44 = vmax.f32 %v1482_v10, %v3006_v46  ;;  %v1488_v3 = vsel %vm1367_vm3, %v1003_v2, -inf }
 0x14c   :  { %1856 = vst.msk [vmem:[%s3477_s3 + $0x30] sm:$0xf] %vm1843_vm4, %v2079_v27  ;;  %v2082_v43 = vpack.c.bf16 %v1678_v29, %v1678_v29  ;;  %v1676_v37 = vmax.f32 %v1640_v22, 0.0  ;;  %v1500_v14 = vmax.f32 %v1498_v32, %v1499_v19  ;;  %v1489_v38 = vmax.f32 %v3010_v48, %v1488_v3 }
 0x14d   :  { %v1486_v55 = vmax.f32 %v1484_v44, %v1485_v28  ;;  %v1505_v5 = vmax.f32 %v1503_v41, %v3014_v47  ;;  %v1506_v40 = vsel %vm1367_vm3, %v2308_v21, -inf  ;;  %v1492_v45 = vsel %vm1367_vm3, %v1291_v33, -inf  ;;  %v2239_v46 = vpop.f32.mrb[56].mxu0  ;;  %v2311_v25 = vpop.f32.mrb[56].mxu1 }
 0x14e   :  { %1859 = vst.msk [vmem:[%s3477_s3 + $0x3c] sm:$0xf] %vm1843_vm4, %v2082_v43  ;;  %v2080_v35 = vpack.c.bf16 %v1676_v37, %v1676_v37  ;;  %v1645_v18 = vadd.f32 %v3125_v59, %v1500_v14  ;;  %v1491_v62 = vmax.f32 %v1489_v38, %v3018_v39  ;;  %v1523_v48 = vsel %vm1367_vm3, %v2239_v46, -inf  ;;  %v1016_v4 = vpop.f32.mrb[57].mxu0  ;;  %v1304_v47 = vpop.f32.mrb[57].mxu1 }
 0x14f   :  { %v1643_v12 = vadd.f32 %v3125_v59, %v1486_v55  ;;  %v1507_v23 = vmax.f32 %v1505_v5, %v1506_v40  ;;  %v1524_v36 = vmax.f32 %v3022_v50, %v1523_v48  ;;  %v1509_v17 = vsel %vm1367_vm3, %v1016_v4, -inf  ;;  %v2240_v13 = vpop.f32.mrb[58].mxu0  ;;  %v2312_v30 = vpop.f32.mrb[58].mxu1  ;;  %v3519_v5 = vld [vmem:[#allocation16_spill] sm:$0xff]  ;;  %v3521_v4 = vld [vmem:[#allocation18_spill] sm:$0xff] }
 0x150   :  { %1857 = vst.msk [vmem:[%s3477_s3 + $0x34] sm:$0xf] %vm1843_vm4, %v2080_v35  ;;  %v1681_v34 = vmax.f32 %v1645_v18, 0.0  ;;  %v1493_v39 = vmax.f32 %v1491_v62, %v1492_v45  ;;  %v1510_v20 = vmax.f32 %v3026_v49, %v1509_v17  ;;  %v1527_v19 = vsel %vm1367_vm3, %v2311_v25, -inf  ;;  %v1019_v31 = vpop.f32.mrb[59].mxu0  ;;  %v1307_v21 = vpop.f32.mrb[59].mxu1 }
 0x151   :  { %v1679_v26 = vmax.f32 %v1643_v12, 0.0  ;;  %v1646_v50 = vadd.f32 %v3125_v59, %v1507_v23  ;;  %v1526_v16 = vmax.f32 %v1524_v36, %v3030_v52  ;;  %v1530_v42 = vsel %vm1367_vm3, %v2240_v13, -inf  ;;  %v3520_v62 = vld [vmem:[#allocation17_spill] sm:$0xff] }
 0x152   :  { %v2085_v24 = vpack.c.bf16 %v1681_v34, %v1681_v34  ;;  %v1644_v2 = vadd.f32 %v3125_v59, %v1493_v39  ;;  %v1531_v33 = vmax.f32 %v3034_v51, %v1530_v42  ;;  %v1512_v58 = vmax.f32 %v1510_v20, %v3038_v53  ;;  %v3522_v20 = vld [vmem:[#allocation19_spill] sm:$0xff] }
 0x153   :  { %v2083_v10 = vpack.c.bf16 %v1679_v26, %v1679_v26  ;;  %v1682_v49 = vmax.f32 %v1646_v50, 0.0  ;;  %v1528_v0 = vmax.f32 %v1526_v16, %v1527_v19  ;;  %v1513_v28 = vsel %vm1367_vm3, %v1304_v47, -inf  ;;  %v3524_v50 = vld [vmem:[#allocation21_spill] sm:$0xff] }
 0x154   :  { %1862 = vst.msk [vmem:[%s3477_s3 + $0x48] sm:$0xf] %vm1843_vm4, %v2085_v24  ;;  %v1680_v52 = vmax.f32 %v1644_v2, 0.0  ;;  %v1514_v27 = vmax.f32 %v1512_v58, %v1513_v28  ;;  %v1516_v29 = vsel %vm1367_vm3, %v1019_v31, -inf  ;;  %v1533_v22 = vmax.f32 %v1531_v33, %v3046_v56  ;;  %v3523_v31 = vld [vmem:[#allocation20_spill] sm:$0xff]  ;;  %v3525_v58 = vld [vmem:[#allocation22_spill] sm:$0xff] }
 0x155   :  { %1860 = vst.msk [vmem:[%s3477_s3 + $0x40] sm:$0xf] %vm1843_vm4, %v2083_v10  ;;  %v2086_v51 = vpack.c.bf16 %v1682_v49, %v1682_v49  ;;  %v1649_v53 = vadd.f32 %v3125_v59, %v1528_v0  ;;  %v1517_v32 = vmax.f32 %v3042_v54, %v1516_v29  ;;  %v1534_v9 = vsel %vm1367_vm3, %v2312_v30, -inf  ;;  %v2243_v41 = vpop.f32.mrb[60].mxu0  ;;  %v2315_v44 = vpop.f32.mrb[60].mxu1  ;;  %v3526_v49 = vld [vmem:[#allocation23_spill] sm:$0xff] }
 0x156   :  { %v2084_v3 = vpack.c.bf16 %v1680_v52, %v1680_v52  ;;  %v1647_v43 = vadd.f32 %v3125_v59, %v1514_v27  ;;  %v1535_v37 = vmax.f32 %v1533_v22, %v1534_v9  ;;  %v1520_v56 = vsel %vm1367_vm3, %v1307_v21, -inf  ;;  %v1032_v14 = vpop.f32.mrb[61].mxu0  ;;  %v1320_v38 = vpop.f32.mrb[61].mxu1  ;;  %v3527_v9 = vld [vmem:[#allocation24_spill] sm:$0xff] }
 0x157   :  { %1863 = vst.msk [vmem:[%s3477_s3 + $0x4c] sm:$0xf] %vm1843_vm4, %v2086_v51  ;;  %v1685_v55 = vmax.f32 %v1649_v53, 0.0  ;;  %v1519_v54 = vmax.f32 %v1517_v32, %v3519_v5  ;;  %v1551_v40 = vsel %vm1367_vm3, %v2243_v41, -inf  ;;  %v1537_v45 = vsel %vm1367_vm3, %v1032_v14, -inf  ;;  %v2244_v46 = vpop.f32.mrb[62].mxu0 }
 0x158   :  { %v2316_v25 = vpop.f32.mrb[62].mxu1  ;;  %1861 = vst.msk [vmem:[%s3477_s3 + $0x44] sm:$0xf] %vm1843_vm4, %v2084_v3  ;;  %v1683_v35 = vmax.f32 %v1647_v43, 0.0  ;;  %v1650_v18 = vadd.f32 %v3125_v59, %v1535_v37  ;;  %v1552_v48 = vmax.f32 %v3520_v62, %v1551_v40  ;;  %v1538_v47 = vmax.f32 %v3521_v4, %v1537_v45  ;;  %v1035_v12 = vpop.f32.mrb[63].mxu0  ;;  %v3528_v14 = vld [vmem:[#allocation2_spill] sm:$0xff] }
 0x159   :  { %v1323_v23 = vpop.f32.mrb[63].mxu1  ;;  %v2089_v36 = vpack.c.bf16 %v1685_v55, %v1685_v55  ;;  %v1521_v17 = vmax.f32 %v1519_v54, %v1520_v56  ;;  %v1555_v13 = vsel %vm1367_vm3, %v2315_v44, -inf  ;;  %v1558_v30 = vsel %vm1367_vm3, %v2244_v46, -inf  ;;  %v3530_v4 = vld [vmem:[#allocation3_spill] sm:$0xff] }
 0x15a   :  { %v2087_v34 = vpack.c.bf16 %v1683_v35, %v1683_v35  ;;  %v1686_v39 = vmax.f32 %v1650_v18, 0.0  ;;  %v1554_v19 = vmax.f32 %v1552_v48, %v3522_v20  ;;  %v1559_v21 = vmax.f32 %v3523_v31, %v1558_v30  ;;  %v3531_v20 = vld [vmem:[#allocation25_spill] sm:$0xff] }
 0x15b   :  { %1866 = vst.msk [vmem:[%s3477_s3 + $0x58] sm:$0xf] %vm1843_vm4, %v2089_v36  ;;  %v1648_v26 = vadd.f32 %v3125_v59, %v1521_v17  ;;  %v1540_v16 = vmax.f32 %v1538_v47, %v3524_v50  ;;  %v1541_v42 = vsel %vm1367_vm3, %v1320_v38, -inf  ;;  %v1544_v24 = vsel %vm1367_vm3, %v1035_v12, -inf }
 0x15c   :  { %1864 = vst.msk [vmem:[%s3477_s3 + $0x50] sm:$0xf] %vm1843_vm4, %v2087_v34  ;;  %v2090_v2 = vpack.c.bf16 %v1686_v39, %v1686_v39  ;;  %v1556_v33 = vmax.f32 %v1554_v19, %v1555_v13  ;;  %v1545_v10 = vmax.f32 %v3525_v58, %v1544_v24  ;;  %v1561_v0 = vmax.f32 %v1559_v21, %v3526_v49 }
 0x15d   :  { %v1684_v28 = vmax.f32 %v1648_v26, 0.0  ;;  %v1542_v52 = vmax.f32 %v1540_v16, %v1541_v42  ;;  %v1562_v27 = vsel %vm1367_vm3, %v2316_v25, -inf  ;;  %v1548_v29 = vsel %vm1367_vm3, %v1323_v23, -inf  ;;  %v2247_v22 = vpop.f32.mrb[64].mxu0  ;;  %v2319_v51 = vpop.f32.mrb[64].mxu1  ;;  %v3529_v25 = vld [vmem:[#allocation4_spill] sm:$0xff] }
 0x15e   :  { %1867 = vst.msk [vmem:[%s3477_s3 + $0x5c] sm:$0xf] %vm1843_vm4, %v2090_v2  ;;  %v1653_v53 = vadd.f32 %v3125_v59, %v1556_v33  ;;  %v1563_v32 = vmax.f32 %v1561_v0, %v1562_v27  ;;  %v1547_v41 = vmax.f32 %v1545_v10, %v3527_v9  ;;  %v1579_v44 = vsel %vm1367_vm3, %v2247_v22, -inf  ;;  %v1048_v3 = vpop.f32.mrb[65].mxu0  ;;  %v1336_v43 = vpop.f32.mrb[65].mxu1 }
 0x15f   :  { %v2088_v37 = vpack.c.bf16 %v1684_v28, %v1684_v28  ;;  %v1651_v56 = vadd.f32 %v3125_v59, %v1542_v52  ;;  %v1580_v38 = vmax.f32 %v3528_v14, %v1579_v44  ;;  %v1565_v55 = vsel %vm1367_vm3, %v1048_v3, -inf  ;;  %v2248_v5 = vpop.f32.mrb[66].mxu0  ;;  %v2320_v54 = vpop.f32.mrb[66].mxu1 }
 0x160   :  { %v1689_v40 = vmax.f32 %v1653_v53, 0.0  ;;  %v1654_v45 = vadd.f32 %v3125_v59, %v1563_v32  ;;  %v1549_v46 = vmax.f32 %v1547_v41, %v1548_v29  ;;  %v1566_v35 = vmax.f32 %v3529_v25, %v1565_v55  ;;  %v1051_v18 = vpop.f32.mrb[67].mxu0  ;;  %v1339_v62 = vpop.f32.mrb[67].mxu1 }
 0x161   :  { %1865 = vst.msk [vmem:[%s3477_s3 + $0x54] sm:$0xf] %vm1843_vm4, %v2088_v37  ;;  %v1687_v48 = vmax.f32 %v1651_v56, 0.0  ;;  %v1582_v47 = vmax.f32 %v1580_v38, %v3530_v4  ;;  %v1583_v12 = vsel %vm1367_vm3, %v2319_v51, -inf  ;;  %v1586_v23 = vsel %vm1367_vm3, %v2248_v5, -inf  ;;  %v3532_v38 = vld [vmem:[#allocation5_spill] sm:$0xff] }
 0x162   :  { %v2093_v36 = vpack.c.bf16 %v1689_v40, %v1689_v40  ;;  %v1690_v17 = vmax.f32 %v1654_v45, 0.0  ;;  %v1652_v13 = vadd.f32 %v3125_v59, %v1549_v46  ;;  %v1587_v30 = vmax.f32 %v3105_v61, %v1586_v23 }
 0x163   :  { %v2091_v34 = vpack.c.bf16 %v1687_v48, %v1687_v48  ;;  %v1584_v39 = vmax.f32 %v1582_v47, %v1583_v12  ;;  %v1568_v19 = vmax.f32 %v1566_v35, %v3531_v20  ;;  %v1569_v31 = vsel %vm1367_vm3, %v1336_v43, -inf }
 0x164   :  { %1870 = vst.msk [vmem:[%s3477_s3 + $0x68] sm:$0xf] %vm1843_vm4, %v2093_v36  ;;  %v2094_v21 = vpack.c.bf16 %v1690_v17, %v1690_v17  ;;  %v1688_v26 = vmax.f32 %v1652_v13, 0.0  ;;  %v1572_v50 = vsel %vm1367_vm3, %v1051_v18, -inf  ;;  %v1589_v16 = vmax.f32 %v1587_v30, %v3120_v57 }
 0x165   :  { %1868 = vst.msk [vmem:[%s3477_s3 + $0x60] sm:$0xf] %vm1843_vm4, %v2091_v34  ;;  %v1657_v61 = vadd.f32 %v3125_v59, %v1584_v39  ;;  %v1570_v42 = vmax.f32 %v1568_v19, %v1569_v31  ;;  %v1573_v24 = vmax.f32 %v3116_v1, %v1572_v50  ;;  %v1590_v2 = vsel %vm1367_vm3, %v2320_v54, -inf  ;;  %v2251_v33 = vpop.f32.mrb[68].mxu0  ;;  %v2323_v58 = vpop.f32.mrb[68].mxu1 }
 0x166   :  { %1871 = vst.msk [vmem:[%s3477_s3 + $0x6c] sm:$0xf] %vm1843_vm4, %v2094_v21  ;;  %v2092_v57 = vpack.c.bf16 %v1688_v26, %v1688_v26  ;;  %v1591_v10 = vmax.f32 %v1589_v16, %v1590_v2  ;;  %v1576_v49 = vsel %vm1367_vm3, %v1339_v62, -inf  ;;  %v1607_v0 = vsel %vm1367_vm3, %v2251_v33, -inf  ;;  %v1064_v28 = vpop.f32.mrb[69].mxu0  ;;  %v1352_v52 = vpop.f32.mrb[69].mxu1 }
 0x167   :  { %v1693_v27 = vmax.f32 %v1657_v61, 0.0  ;;  %v1655_v1 = vadd.f32 %v3125_v59, %v1570_v42  ;;  %v1575_v29 = vmax.f32 %v1573_v24, %v3131_v60  ;;  %v1608_v22 = vmax.f32 %v3135_v7, %v1607_v0  ;;  %v2252_v51 = vpop.f32.mrb[70].mxu0  ;;  %v2324_v53 = vpop.f32.mrb[70].mxu1  ;;  %v3533_v62 = vld [vmem:[#allocation15_spill] sm:$0xff] }
 0x168   :  { %1869 = vst.msk [vmem:[%s3477_s3 + $0x64] sm:$0xf] %vm1843_vm4, %v2092_v57  ;;  %v1658_v32 = vadd.f32 %v3125_v59, %v1591_v10  ;;  %v1593_v9 = vsel %vm1367_vm3, %v1064_v28, -inf  ;;  %v1611_v41 = vsel %vm1367_vm3, %v2323_v58, -inf  ;;  %v1614_v44 = vsel %vm1367_vm3, %v2252_v51, -inf  ;;  %v1067_v3 = vpop.f32.mrb[71].mxu0 }
 0x169   :  { %v1355_v43 = vpop.f32.mrb[71].mxu1  ;;  %v2097_v60 = vpack.c.bf16 %v1693_v27, %v1693_v27  ;;  %v1691_v37 = vmax.f32 %v1655_v1, 0.0  ;;  %v1577_v7 = vmax.f32 %v1575_v29, %v1576_v49  ;;  %v1594_v56 = vmax.f32 %v3146_v8, %v1593_v9 }
 0x16a   :  { %v1694_v14 = vmax.f32 %v1658_v32, 0.0  ;;  %v1610_v55 = vmax.f32 %v1608_v22, %v3532_v38  ;;  %v1615_v5 = vmax.f32 %v3217_v63, %v1614_v44  ;;  %v1597_v54 = vsel %vm1367_vm3, %v1352_v52, -inf }
 0x16b   :  { %1874 = vst.msk [vmem:[%s3477_s3 + $0x78] sm:$0xf] %vm1843_vm4, %v2097_v60  ;;  %v2095_v40 = vpack.c.bf16 %v1691_v37, %v1691_v37  ;;  %v1656_v45 = vadd.f32 %v3125_v59, %v1577_v7  ;;  %v1596_v46 = vmax.f32 %v1594_v56, %v3177_v6  ;;  %v1600_v25 = vsel %vm1367_vm3, %v1067_v3, -inf }
 0x16c   :  { %v2098_v8 = vpack.c.bf16 %v1694_v14, %v1694_v14  ;;  %v1612_v35 = vmax.f32 %v1610_v55, %v1611_v41  ;;  %v1601_v18 = vmax.f32 %v3283_v11, %v1600_v25  ;;  %v1617_v63 = vmax.f32 %v1615_v5, %v3256_v15 }
 0x16d   :  { %v1602_v48 = vsel %vm1367_vm3, %v3533_v62, -inf  ;;  %1872 = vst.msk [vmem:[%s3477_s3 + $0x70] sm:$0xf] %vm1843_vm4, %v2095_v40  ;;  %v1692_v4 = vmax.f32 %v1656_v45, 0.0  ;;  %v1598_v47 = vmax.f32 %v1596_v46, %v1597_v54  ;;  %v1618_v6 = vsel %vm1367_vm3, %v2324_v53, -inf }
 0x16e   :  { %1875 = vst.msk [vmem:[%s3477_s3 + $0x7c] sm:$0xf] %vm1843_vm4, %v2098_v8  ;;  %v1661_v11 = vadd.f32 %v3125_v59, %v1612_v35  ;;  %v1619_v15 = vmax.f32 %v1617_v63, %v1618_v6  ;;  %v1603_v12 = vmax.f32 %v1601_v18, %v1602_v48  ;;  %v1604_v17 = vsel %vm1367_vm3, %v1355_v43, -inf }
 0x16f   :  { %v2096_v23 = vpack.c.bf16 %v1692_v4, %v1692_v4  ;;  %v1659_v36 = vadd.f32 %v3125_v59, %v1598_v47 }
 0x170   :  { %v1697_v13 = vmax.f32 %v1661_v11, 0.0  ;;  %v1662_v30 = vadd.f32 %v3125_v59, %v1619_v15  ;;  %v1605_v34 = vmax.f32 %v1603_v12, %v1604_v17 }
 0x171   :  { %1873 = vst.msk [vmem:[%s3477_s3 + $0x74] sm:$0xf] %vm1843_vm4, %v2096_v23  ;;  %v1695_v39 = vmax.f32 %v1659_v36, 0.0 }
 0x172   :  { %v2101_v20 = vpack.c.bf16 %v1697_v13, %v1697_v13  ;;  %v1698_v19 = vmax.f32 %v1662_v30, 0.0  ;;  %v1660_v31 = vadd.f32 %v3125_v59, %v1605_v34 }
 0x173   :  { %v2099_v21 = vpack.c.bf16 %v1695_v39, %v1695_v39 }
 0x174   :  { %1878 = vst.msk [vmem:[%s3477_s3 + $0x88] sm:$0xf] %vm1843_vm4, %v2101_v20  ;;  %v2102_v26 = vpack.c.bf16 %v1698_v19, %v1698_v19  ;;  %v1696_v50 = vmax.f32 %v1660_v31, 0.0 }
 0x175   :  { %1876 = vst.msk [vmem:[%s3477_s3 + $0x80] sm:$0xf] %vm1843_vm4, %v2099_v21 }
 0x176   :  { %1879 = vst.msk [vmem:[%s3477_s3 + $0x8c] sm:$0xf] %vm1843_vm4, %v2102_v26  ;;  %v2100_v16 = vpack.c.bf16 %v1696_v50, %v1696_v50 }
 0x178   :  { %1877 = vst.msk [vmem:[%s3477_s3 + $0x84] sm:$0xf] %vm1843_vm4, %v2100_v16 }

// kernel: cnn_mnist_forward.4
= control target key start
LH: loop header
LB: loop body
LE: loop exit
PB: predicated region body
PF: predicated region fallthrough
CT: control target
= control target key end

     0   :  { %vm230_vm0 = vcmask 998400   ;;  %vm255_vm1 = vcmask 1044480   ;;  %vm356_vm2 = vcmask 162816   ;;  %vm416_vm3 = vcmask 158720   ;;  %s755_s1 = inlined_call_operand.vmem [shape: bf16[250,20], index: 1, kind: input, shape index: {}]   ;;  %s756_s0 = inlined_call_operand.vmem [shape: bf16[4,32,250], index: 0, kind: input, shape index: {}]   ;;  %s757_s2 = inlined_call_operand.vmem [shape: f32[1,20], index: 2, kind: input, shape index: {}]   ;;  %s758_s3 = inlined_call_operand.vmem [shape: bf16[32,20], index: 3, kind: output, shape index: {}]  }
   0x1   :  { %v556_v0 = vld [vmem:[%s755_s1 + $0x40] sm:$0xff]   ;;  %v558_v2 = vld [vmem:[%s755_s1 + $0x48] sm:$0xff]   ;;  %v560_v4 = vld [vmem:[%s755_s1 + $0x50] sm:$0xff]  }
   0x2   :  { %v557_v1 = vld [vmem:[%s755_s1] sm:$0xff]   ;;  %474 = vmatprep.subr.bf16.mxu0 %v556_v0  ;;  %538 = vmatprep.subr.bf16.mxu1 %v556_v0  ;;  %v559_v3 = vld [vmem:[%s755_s1 + $0x8] sm:$0xff]   ;;  %v561_v5 = vld [vmem:[%s755_s1 + $0x10] sm:$0xff]  }
   0x3   :  { %475 = vmatpush3.bf16.msra.mxu0 %v557_v1  ;;  %546 = vmatpush3.bf16.msra.mxu1 %v557_v1  ;;  %v562_v6 = vld [vmem:[%s755_s1 + $0x58] sm:$0xff]   ;;  %v564_v8 = vld [vmem:[%s755_s1 + $0x60] sm:$0xff]   ;;  %v566_v10 = vld [vmem:[%s755_s1 + $0x68] sm:$0xff]  }
   0x4   :  { %476 = vmatprep.subr.bf16.mxu0 %v558_v2  ;;  %539 = vmatprep.subr.bf16.mxu1 %v558_v2  ;;  %v563_v7 = vld [vmem:[%s755_s1 + $0x18] sm:$0xff]   ;;  %v565_v9 = vld [vmem:[%s755_s1 + $0x20] sm:$0xff]   ;;  %v567_v13 = vld [vmem:[%s755_s1 + $0x28] sm:$0xff]  }
   0x5   :  { %v574_v11 = vld [vmem:[%s756_s0 + $0x4] ss:$8 sps:$4 sm:$0xff]   ;;  %v568_v14 = vld [vmem:[%s755_s1 + $0x70] sm:$0xff]   ;;  %v570_v16 = vld [vmem:[%s755_s1 + $0x78] sm:$0x1f]  }
   0x6   :  { %v577_v12 = vld [vmem:[%s756_s0 + $0x44] ss:$8 sps:$4 sm:$0xff]   ;;  %457 = vmatprep.mubr.msk.bf16.mxu0 %vm230_vm0, %v574_v11  ;;  %v569_v15 = vld [vmem:[%s755_s1 + $0x30] sm:$0xff]   ;;  %v571_v17 = vld [vmem:[%s755_s1 + $0x38] sm:$0xff]  }
   0x7   :  { %477 = vmatpush3.bf16.msra.mxu0 %v559_v3  ;;  %547 = vmatpush3.bf16.msra.mxu1 %v559_v3  ;;  %v572_v18 = vld [vmem:[%s756_s0] ss:$8 sps:$4 sm:$0xff]   ;;  %v578_v20 = vld [vmem:[%s756_s0 + $0x14] ss:$8 sps:$4 sm:$0xff]   ;;  %v580_v22 = vld [vmem:[%s756_s0 + $0x10] ss:$8 sps:$4 sm:$0xff]  }
   0x8   :  { %478 = vmatprep.subr.bf16.mxu0 %v560_v4  ;;  %540 = vmatprep.subr.bf16.mxu1 %v560_v4  ;;  %v575_v19 = vld [vmem:[%s756_s0 + $0x40] ss:$8 sps:$4 sm:$0xff]   ;;  %v581_v21 = vld [vmem:[%s756_s0 + $0x54] ss:$8 sps:$4 sm:$0xff]   ;;  %v583_v23 = vld [vmem:[%s756_s0 + $0x50] ss:$8 sps:$4 sm:$0xff]  }
   0x9   :  { %461 = vmatprep.mubr.msk.bf16.mxu1 %vm230_vm0, %v577_v12  ;;  %v584_v24 = vld [vmem:[%s756_s0 + $0x24] ss:$8 sps:$4 sm:$0xff]   ;;  %v586_v26 = vld [vmem:[%s756_s0 + $0x20] ss:$8 sps:$4 sm:$0xff]   ;;  %v590_v28 = vld [vmem:[%s756_s0 + $0x34] ss:$8 sps:$4 sm:$0xff]  }
   0xa   :  { %v587_v25 = vld [vmem:[%s756_s0 + $0x64] ss:$8 sps:$4 sm:$0xff]   ;;  %v589_v27 = vld [vmem:[%s756_s0 + $0x60] ss:$8 sps:$4 sm:$0xff]   ;;  %v593_v29 = vld [vmem:[%s756_s0 + $0x74] ss:$8 sps:$4 sm:$0xff]  }
   0xb   :  { %479 = vmatpush3.bf16.msra.mxu0 %v561_v5  ;;  %548 = vmatpush3.bf16.msra.mxu1 %v561_v5  ;;  %v592_v30 = vld [vmem:[%s756_s0 + $0x30] ss:$8 sps:$4 sm:$0xff]  }
   0xc   :  { %480 = vmatprep.subr.bf16.mxu0 %v562_v6  ;;  %541 = vmatprep.subr.bf16.mxu1 %v562_v6  ;;  %v595_v31 = vld [vmem:[%s756_s0 + $0x70] ss:$8 sps:$4 sm:$0xff]  }
   0xf   :  { %481 = vmatpush3.bf16.msra.mxu0 %v563_v7  ;;  %549 = vmatpush3.bf16.msra.mxu1 %v563_v7 }
  0x10   :  { %482 = vmatprep.subr.bf16.mxu0 %v564_v8  ;;  %542 = vmatprep.subr.bf16.mxu1 %v564_v8 }
  0x13   :  { %483 = vmatpush3.bf16.msra.mxu0 %v565_v9  ;;  %550 = vmatpush3.bf16.msra.mxu1 %v565_v9 }
  0x14   :  { %484 = vmatprep.subr.bf16.mxu0 %v566_v10  ;;  %543 = vmatprep.subr.bf16.mxu1 %v566_v10 }
  0x17   :  { %485 = vmatpush3.bf16.msra.mxu0 %v567_v13  ;;  %551 = vmatpush3.bf16.msra.mxu1 %v567_v13 }
  0x18   :  { %486 = vmatprep.subr.bf16.mxu0 %v568_v14  ;;  %544 = vmatprep.subr.bf16.mxu1 %v568_v14  ;;  %v465_v14 = vld [vmem:[%s757_s2] ss:$0 sm:$0xff] }
  0x1b   :  { %487 = vmatpush3.bf16.msra.mxu0 %v569_v15  ;;  %552 = vmatpush3.bf16.msra.mxu1 %v569_v15 }
  0x1c   :  { %554 = vmatprep.subr.msk.bf16.mxu0 %vm255_vm1, %v570_v16  ;;  %555 = vmatprep.subr.msk.bf16.mxu1 %vm255_vm1, %v570_v16 }
  0x1f   :  { %489 = vmatpush3.bf16.msra.mxu0 %v571_v17  ;;  %553 = vmatpush3.bf16.msra.mxu1 %v571_v17 }
  0x22   :  { %292 = vmatmul.mubr.bf16.vlgmr.msra.gmra.mrb[0].mxu0 %v572_v18  ;;  %324 = vmatmul.mubr.bf16.vlgmr.msra.gmra.mrb[0].mxu1 %v575_v19 }
  0x23   :  { %458 = vmatprep.mubr.msk.bf16.mxu0 %vm230_vm0, %v578_v20  ;;  %462 = vmatprep.mubr.msk.bf16.mxu1 %vm230_vm0, %v581_v21 }
  0x2a   :  { %300 = vmatmul.mubr.bf16.gmra.mrb[4].mxu0 %v580_v22  ;;  %332 = vmatmul.mubr.bf16.gmra.mrb[4].mxu1 %v583_v23 }
  0x2b   :  { %459 = vmatprep.mubr.msk.bf16.mxu0 %vm230_vm0, %v584_v24  ;;  %463 = vmatprep.mubr.msk.bf16.mxu1 %vm230_vm0, %v587_v25 }
  0x32   :  { %308 = vmatmul.mubr.bf16.gmra.mrb[8].mxu0 %v586_v26  ;;  %340 = vmatmul.mubr.bf16.gmra.mrb[8].mxu1 %v589_v27 }
  0x33   :  { %460 = vmatprep.mubr.msk.bf16.mxu0 %vm230_vm0, %v590_v28  ;;  %464 = vmatprep.mubr.msk.bf16.mxu1 %vm230_vm0, %v593_v29 }
  0x3a   :  { %316 = vmatmul.mubr.bf16.gmra.mrb[12].mxu0 %v592_v30  ;;  %348 = vmatmul.mubr.bf16.gmra.mrb[12].mxu1 %v595_v31 }
  0xf5   :  { %v490_v32 = vpop.f32.mrb[0].mxu0  ;;  %v514_v33 = vpop.f32.mrb[0].mxu1 }
  0xf6   :  { %v491_v34 = vpop.f32.mrb[1].mxu0  ;;  %v515_v35 = vpop.f32.mrb[1].mxu1 }
  0xf7   :  { %v492_v36 = vadd.f32 %v491_v34, %v490_v32  ;;  %v493_v37 = vpop.f32.mrb[2].mxu0  ;;  %v516_v38 = vadd.f32 %v515_v35, %v514_v33  ;;  %v517_v39 = vpop.f32.mrb[2].mxu1 }
  0xf8   :  { %v494_v40 = vpop.f32.mrb[3].mxu0  ;;  %v518_v41 = vpop.f32.mrb[3].mxu1 }
  0xf9   :  { %v495_v42 = vadd.f32 %v494_v40, %v493_v37  ;;  %v519_v43 = vadd.f32 %v518_v41, %v517_v39  ;;  %v357_v2 = vsel %vm356_vm2, %v492_v36, -inf  ;;  %v360_v7 = vsel %vm356_vm2, %v516_v38, -inf }
  0xfb   :  { %v364_v8 = vsel %vm356_vm2, %v495_v42, -inf  ;;  %v367_v13 = vsel %vm356_vm2, %v519_v43, -inf }
  0xfd   :  { %v496_v44 = vpop.f32.mrb[4].mxu0  ;;  %v520_v45 = vpop.f32.mrb[4].mxu1 }
  0xfe   :  { %v497_v46 = vpop.f32.mrb[5].mxu0  ;;  %v521_v47 = vpop.f32.mrb[5].mxu1 }
  0xff   :  { %v498_v48 = vadd.f32 %v497_v46, %v496_v44  ;;  %v499_v49 = vpop.f32.mrb[6].mxu0  ;;  %v522_v50 = vadd.f32 %v521_v47, %v520_v45  ;;  %v523_v51 = vpop.f32.mrb[6].mxu1 }
 0x100   :  { %v500_v52 = vpop.f32.mrb[7].mxu0  ;;  %v524_v53 = vpop.f32.mrb[7].mxu1 }
 0x101   :  { %v501_v54 = vadd.f32 %v500_v52, %v499_v49  ;;  %v525_v55 = vadd.f32 %v524_v53, %v523_v51  ;;  %v371_v30 = vsel %vm356_vm2, %v498_v48, -inf  ;;  %v374_v37 = vsel %vm356_vm2, %v522_v50, -inf }
 0x103   :  { %v378_v38 = vsel %vm356_vm2, %v501_v54, -inf  ;;  %v381_v45 = vsel %vm356_vm2, %v525_v55, -inf }
 0x105   :  { %v502_v56 = vpop.f32.mrb[8].mxu0  ;;  %v526_v57 = vpop.f32.mrb[8].mxu1 }
 0x106   :  { %v503_v58 = vpop.f32.mrb[9].mxu0  ;;  %v527_v59 = vpop.f32.mrb[9].mxu1 }
 0x107   :  { %v504_v60 = vadd.f32 %v503_v58, %v502_v56  ;;  %v505_v61 = vpop.f32.mrb[10].mxu0  ;;  %v528_v62 = vadd.f32 %v527_v59, %v526_v57  ;;  %v529_v63 = vpop.f32.mrb[10].mxu1 }
 0x108   :  { %v506_v0 = vpop.f32.mrb[11].mxu0  ;;  %v530_v1 = vpop.f32.mrb[11].mxu1 }
 0x109   :  { %v358_v3 = vsel %vm356_vm2, %v504_v60, -inf  ;;  %v507_v4 = vadd.f32 %v506_v0, %v505_v61  ;;  %v531_v5 = vadd.f32 %v530_v1, %v529_v63  ;;  %v362_v9 = vsel %vm356_vm2, %v528_v62, -inf }
 0x10a   :  { %v359_v6 = vmax.f32 %v357_v2, %v358_v3 }
 0x10b   :  { %v365_v10 = vsel %vm356_vm2, %v507_v4, -inf  ;;  %v369_v21 = vsel %vm356_vm2, %v531_v5, -inf }
 0x10c   :  { %v361_v11 = vmax.f32 %v359_v6, %v360_v7  ;;  %v366_v12 = vmax.f32 %v364_v8, %v365_v10 }
 0x10d   :  { %v508_v15 = vpop.f32.mrb[12].mxu0  ;;  %v532_v16 = vpop.f32.mrb[12].mxu1 }
 0x10e   :  { %v363_v17 = vmax.f32 %v361_v11, %v362_v9  ;;  %v368_v18 = vmax.f32 %v366_v12, %v367_v13  ;;  %v509_v19 = vpop.f32.mrb[13].mxu0  ;;  %v533_v20 = vpop.f32.mrb[13].mxu1 }
 0x10f   :  { %v510_v22 = vadd.f32 %v509_v19, %v508_v15  ;;  %v511_v23 = vpop.f32.mrb[14].mxu0  ;;  %v534_v24 = vadd.f32 %v533_v20, %v532_v16  ;;  %v535_v25 = vpop.f32.mrb[14].mxu1 }
 0x110   :  { %v392_v26 = vadd.f32 %v465_v14, %v363_v17  ;;  %v370_v27 = vmax.f32 %v368_v18, %v369_v21  ;;  %v512_v28 = vpop.f32.mrb[15].mxu0  ;;  %v536_v29 = vpop.f32.mrb[15].mxu1 }
 0x111   :  { %v372_v31 = vsel %vm356_vm2, %v510_v22, -inf  ;;  %v513_v32 = vadd.f32 %v512_v28, %v511_v23  ;;  %v537_v33 = vadd.f32 %v536_v29, %v535_v25  ;;  %v376_v39 = vsel %vm356_vm2, %v534_v24, -inf }
 0x112   :  { %v396_v34 = vmax.f32 %v392_v26, 0.0  ;;  %v393_v35 = vadd.f32 %v465_v14, %v370_v27  ;;  %v373_v36 = vmax.f32 %v371_v30, %v372_v31 }
 0x113   :  { %v379_v40 = vsel %vm356_vm2, %v513_v32, -inf  ;;  %v383_v49 = vsel %vm356_vm2, %v537_v33, -inf }
 0x114   :  { %v470_v41 = vpack.c.bf16 %v396_v34, %v396_v34  ;;  %v397_v42 = vmax.f32 %v393_v35, 0.0  ;;  %v375_v43 = vmax.f32 %v373_v36, %v374_v37  ;;  %v380_v44 = vmax.f32 %v378_v38, %v379_v40 }
 0x116   :  { %417 = vst.msk [vmem:[%s758_s3] sm:$0xf] %vm416_vm3, %v470_v41  ;;  %v471_v46 = vpack.c.bf16 %v397_v42, %v397_v42  ;;  %v377_v47 = vmax.f32 %v375_v43, %v376_v39  ;;  %v382_v48 = vmax.f32 %v380_v44, %v381_v45 }
 0x118   :  { %418 = vst.msk [vmem:[%s758_s3 + $0x4] sm:$0xf] %vm416_vm3, %v471_v46  ;;  %v394_v50 = vadd.f32 %v465_v14, %v377_v47  ;;  %v384_v51 = vmax.f32 %v382_v48, %v383_v49 }
 0x11a   :  { %v398_v52 = vmax.f32 %v394_v50, 0.0  ;;  %v395_v53 = vadd.f32 %v465_v14, %v384_v51 }
 0x11c   :  { %v472_v54 = vpack.c.bf16 %v398_v52, %v398_v52  ;;  %v399_v55 = vmax.f32 %v395_v53, 0.0 }
 0x11e   :  { %419 = vst.msk [vmem:[%s758_s3 + $0x8] sm:$0xf] %vm416_vm3, %v472_v54  ;;  %v473_v56 = vpack.c.bf16 %v399_v55, %v399_v55 }
 0x120   :  { %420 = vst.msk [vmem:[%s758_s3 + $0xc] sm:$0xf] %vm416_vm3, %v473_v56 }

// kernel: cnn_mnist_forward.5
= control target key start
LH: loop header
LB: loop body
LE: loop exit
PB: predicated region body
PF: predicated region fallthrough
CT: control target
= control target key end

     0   :  { %v554_v2 = vmov 0.0   ;;  %vm555_vm0 = vmmov 0   ;;  %v82_v15 = vlaneseq  ;;  %v556_v19 = vmov 1966171168   ;;  %s696_s0 = inlined_call_operand.vmem [shape: bf16[2,320], index: 0, kind: input, shape index: {}]   ;;  %s697_s1 = inlined_call_operand.vmem [shape: bf16[320,50], index: 1, kind: input, shape index: {}]   ;;  %s698_s2 = inlined_call_operand.vmem [shape: f32[1,50], index: 2, kind: input, shape index: {}]   ;;  %s699_s3 = inlined_call_operand.vmem [shape: bf16[50,10], index: 3, kind: input, shape index: {}]   ;;  %s700_s4 = inlined_call_operand.vmem [shape: f32[1,10], index: 4, kind: input, shape index: {}]   ;;  %s701_s5 = inlined_call_operand.hbm [shape: f32[2,10], index: 5, kind: output, shape index: {}]  }
   0x1   :  { %v502_v0 = vld [vmem:[%s697_s1 + $0x40] sm:$0xff]   ;;  %474 = vmatprep.subr.bf16.mxu1 %v554_v2  ;;  %v504_v3 = vld [vmem:[%s697_s1 + $0x48] sm:$0xff]   ;;  %482 = vmatprep.mubr.msk.bf16.mxu1 %vm555_vm0, %v554_v2  ;;  %v506_v5 = vld [vmem:[%s697_s1 + $0x50] sm:$0xff]   ;;  %v80_v20 = vunpack.c.l.s4 %v556_v19 }
   0x2   :  { %v503_v1 = vld [vmem:[%s697_s1] sm:$0xff]   ;;  %442 = vmatprep.subr.bf16.mxu0 %v502_v0  ;;  %v505_v4 = vld [vmem:[%s697_s1 + $0x8] sm:$0xff]   ;;  %v507_v6 = vld [vmem:[%s697_s1 + $0x10] sm:$0xff]   ;;  %v83_v21 = vshrl.u32 %v82_v15, 7 }
   0x3   :  { %443 = vmatpush3.bf16.msra.mxu0 %v503_v1  ;;  %v508_v7 = vld [vmem:[%s697_s1 + $0x58] sm:$0xff]   ;;  %v512_v8 = vld [vmem:[%s697_s1 + $0x80] sm:$0xff]   ;;  %v515_v11 = vld [vmem:[%s697_s1 + $0x88] sm:$0xff]   ;;  %v81_v25 = vunpack.c.0.s8 %v80_v20 }
   0x4   :  { %444 = vmatprep.subr.bf16.mxu0 %v504_v3  ;;  %v509_v9 = vld [vmem:[%s697_s1 + $0x18] sm:$0xff]   ;;  %v510_v10 = vld [vmem:[%s697_s1 + $0x60] sm:$0xff]   ;;  %475 = vmatpush3.bf16.msra.mxu1 %v512_v8  ;;  %v513_v13 = vld [vmem:[%s697_s1 + $0x68] sm:$0xff]  }
   0x5   :  { %476 = vmatprep.subr.bf16.mxu1 %v554_v2  ;;  %v511_v12 = vld [vmem:[%s697_s1 + $0x20] sm:$0xff]   ;;  %v518_v14 = vld [vmem:[%s697_s1 + $0x90] sm:$0xff]   ;;  %v514_v16 = vld [vmem:[%s697_s1 + $0x28] sm:$0xff]  }
   0x6   :  { %v516_v17 = vld [vmem:[%s697_s1 + $0x70] sm:$0xff]   ;;  %v414_v18 = vld.sshfl [vmem:[%s696_s0] sm:$0x13 pattern:$0x75316420]  ;;  %v521_v22 = vld [vmem:[%s697_s1 + $0x98] sm:$0xff]  }
   0x7   :  { %445 = vmatpush3.bf16.msra.mxu0 %v505_v4  ;;  %v517_v23 = vld [vmem:[%s697_s1 + $0x30] sm:$0xff]   ;;  %v78_v24 = vcombine.high %v414_v18, %v414_v18 }
   0x8   :  { %446 = vmatprep.subr.bf16.mxu0 %v506_v5  ;;  %477 = vmatpush3.bf16.msra.mxu1 %v515_v11 }
   0x9   :  { %478 = vmatprep.subr.bf16.mxu1 %v554_v2 }
   0xb   :  { %447 = vmatpush3.bf16.msra.mxu0 %v507_v6 }
   0xc   :  { %448 = vmatprep.subr.bf16.mxu0 %v508_v7  ;;  %479 = vmatpush3.bf16.msra.mxu1 %v518_v14 }
   0xd   :  { %480 = vmatprep.subr.bf16.mxu1 %v554_v2 }
   0xf   :  { %449 = vmatpush3.bf16.msra.mxu0 %v509_v9 }
  0x10   :  { %450 = vmatprep.subr.bf16.mxu0 %v510_v10 }
  0x13   :  { %451 = vmatpush3.bf16.msra.mxu0 %v511_v12 }
  0x14   :  { %452 = vmatprep.subr.bf16.mxu0 %v513_v13 }
  0x17   :  { %453 = vmatpush3.bf16.msra.mxu0 %v514_v16 }
  0x18   :  { %10 = vsyncpa [#allocation3], 0  ;;  %454 = vmatprep.subr.bf16.mxu0 %v516_v17  ;;  %v519_v26 = vld [vmem:[%s697_s1 + $0x78] sm:$0xff]   ;;  %v84_v27 = vsub.s32 %v81_v25, %v83_v21  ;;  %481 = vmatpush3.bf16.msra.mxu1 %v521_v22  ;;  %vm216_vm1 = vcmask 523264   ;;  %v522_v31 = vld [vmem:[%s699_s3] sm:$0xff]   ;;  %vm341_vm2 = vcmask 1040384  }
  0x19   :  { %486 = vmatprep.subr.bf16.mxu1 %v554_v2  ;;  %v520_v30 = vld [vmem:[%s697_s1 + $0x38] sm:$0xff]   ;;  %v523_v33 = vld [vmem:[%s699_s3 + $0x8] sm:$0xff]   ;;  %v524_v34 = vld [vmem:[%s699_s3 + $0x10] sm:$0xff]   ;;  %vm337_vm3 = vcmask 408576   ;;  %vm385_vm4 = vcmask 74752  }
  0x1a   :  { %v92_v28 = vrot.slane %v78_v24, %v84_v27  ;;  %v85_v29 = vrot.slane %v414_v18, %v84_v27  ;;  %v525_v35 = vld [vmem:[%s699_s3 + $0x18] ss:$0 sps:$4 sm:$0x11]   ;;  %v413_v43 = vld [vmem:[%s698_s2] ss:$0 sm:$0xff]  ;;  %s557_s2 = smov [#allocation2]  }
  0x1b   :  { %455 = vmatpush3.bf16.msra.mxu0 %v517_v23  ;;  %v343_v36 = vsel %vm341_vm2, %v525_v35, 0  ;;  %v436_v51 = vld [vmem:[%s700_s4] ss:$0 sm:$0xff]  ;;  %s405_s4 = sshll.u32 %s557_s2, 4  ;;  %s406_s4 = int_to_ptr.vmem [resolvable:$true] %s405_s4 }
  0x1c   :  { %456 = vmatprep.subr.bf16.mxu0 %v519_v26  ;;  %252 = vmatprep.mubr.bf16.mxu0 %v92_v28  ;;  %v93_v32 = vcombine.high %v85_v29, %v85_v29  ;;  %s530_s19 = scalar_lea.vmem %s406_s4, 32  ;;  %p535_p1 = scmp.lt.s32.totalorder %s406_s4, %s406_s4 }
  0x1d   :  { %p531_p0 = scmp.ne.s32.totalorder %s406_s4, %s530_s19  ;;  %p536_p2 = scmp.lt.s32.totalorder %s530_s19, %s530_s19 }
  0x1e   :  { %483 = vmatmul.mubr.msk.bf16.vlgmr.msra.gmra.mrb[0].mxu1 %vm216_vm1, %v93_v32 }
  0x1f   :  { %457 = vmatpush3.bf16.msra.mxu0 %v520_v30  ;;  %487 = vmatpush3.bf16.msra.mxu1 %v522_v31  ;;  %p537_p3 = por %p536_p2, %p535_p1 }
  0x20   :  { %488 = vmatprep.subr.bf16.mxu1 %v554_v2  ;;  %494 = vmatprep.mubr.msk.bf16.mxu1 %vm555_vm0, %v554_v2 }
  0x21   :  { %p538_p4 = pnand %p537_p3, %p531_p0 }
  0x22   :  { %253 = vmatmul.mubr.bf16.vlgmr.msra.gmra.mrb[0].mxu0 %v85_v29 }
  0x23   :  { %489 = vmatpush3.bf16.msra.mxu1 %v523_v33 }
  0x24   :  { %490 = vmatprep.subr.bf16.mxu1 %v554_v2 }
  0x27   :  { %491 = vmatpush3.bf16.msra.mxu1 %v524_v34 }
  0x28   :  { %492 = vmatprep.subr.bf16.mxu1 %v554_v2 }
  0x2b   :  { %493 = vmatpush3.bf16.msra.mxu1 %v343_v36 }
  0xf1   :  { %v294_v37 = vpop.f32.mrb[0].mxu1 }
  0xf2   :  { %v484_v38 = vpop.f32.mrb[1].mxu1 }
  0xf3   :  { %v297_v39 = vpop.f32.mrb[2].mxu1 }
  0xf4   :  { %v485_v40 = vpop.f32.mrb[3].mxu1 }
  0xf5   :  { %v458_v41 = vpop.f32.mrb[0].mxu0 }
  0xf6   :  { %v459_v42 = vpop.f32.mrb[1].mxu0 }
  0xf7   :  { %v460_v44 = vadd.f32 %v459_v42, %v458_v41  ;;  %v461_v45 = vpop.f32.mrb[2].mxu0 }
  0xf8   :  { %v462_v46 = vpop.f32.mrb[3].mxu0 }
  0xf9   :  { %v255_v47 = vadd.f32 %v460_v44, %v413_v43 }
  0xfb   :  { %v295_v48 = vadd.f32 %v294_v37, %v255_v47 }
  0xfd   :  { %v300_v49 = vmax.f32 %v295_v48, 0.0 }
  0xff   :  { %v301_v50 = vpack.c.bf16 %v300_v49, %v300_v49 }
 0x101   :  { %495 = vmatmul.mubr.msk.bf16.vlgmr.msra.gmra.mrb[4].mxu1 %vm337_vm3, %v301_v50 }
 0x1d4   :  { %v379_v52 = vpop.f32.mrb[4].mxu1 }
 0x1d5   :  { %v380_v53 = vadd.f32 %v436_v51, %v379_v52  ;;  %v496_v54 = vpop.f32.mrb[5].mxu1 }
 0x1d6   :  { %v382_v55 = vpop.f32.mrb[6].mxu1 }
 0x1d7   :  { %v497_v56 = vpop.f32.mrb[7].mxu1  ;;  %v386_v57 = vsel %vm385_vm4, %v380_v53, -inf }
 0x1d8   :  { %387 = vmax.xlane.f32.xlu0 %v386_v57 }
 0x265   :  { %v388_v58 = vpop.xlane.xlu0 %387 }
 0x266   :  { %v389_v59 = vsub.f32 %v380_v53, %v388_v58 }
 0x268   :  { %v390_v60 = vmul.f32 1.442695, %v389_v59 }
 0x26a   :  { %526 = vpow2.f32 %v390_v60 }
 0x274   :  { %v527_v61 = vpop.eup %526 }
 0x275   :  { %v392_v62 = vsel %vm385_vm4, %v527_v61, 0.0 }
 0x276   :  { %393 = vadd.xlane.f32.xlu0 %v392_v62 }
 0x303   :  { %v394_v63 = vpop.xlane.xlu0 %393 }
 0x304   :  { %528 = vlog2.f32 %v394_v63 }
 0x30e   :  { %v529_v0 = vpop.eup %528 }
 0x30f   :  { %v396_v1 = vmul.f32 0.6931472, %v529_v0 }
 0x311   :  { %v397_v2 = vsub.f32 %v389_v59, %v396_v1 }
 0x313   :  { %398 = vst.msk [vmem:[#allocation2] sm:$0x3] %vm385_vm4, %v397_v2 }
 0x314   :  { %541 = shalt.err (!%p538_p4)
}
 0x315   :  { %s542_s22 = scalar_lea.hbm %s701_s5, 32 }
 0x316   :  { %p543_p5 = scmp.ne.s32.totalorder %s701_s5, %s542_s22  ;;  %p546_p6 = scmp.lt.u32.totalorder %s542_s22, %s701_s5 }
 0x318   :  { %p548_p7 = pnand %p546_p6, %p543_p5 }
 0x31a   :  { %551 = shalt.err (!%p548_p7)
}
 0x31b   :  { %408 = dma.vmem_to_hbm [thread:$0]  %s406_s4, 32, %s701_s5, [#allocation3]  }
 0x31c   :  { %552 = dma.done.wait [#allocation3], 32  }
 0x31d   :  { %553 = vsyncadd [#allocation3], 4294967264 }
 0x31e   :  { %412 = vsyncpa [#allocation3], 1 }

</bundles_post_ra>
